<compile_context>
chip_gen: v6e
topology: v6e:2x2x1
jax: 0.10.0
libtpu: 0.0.40
codegen_flags: <defaults>
</compile_context>

<pallas_src>
import jax
import jax.numpy as jnp
from jax.experimental import pallas as pl
from jax.experimental.pallas import tpu as pltpu


# ----------------------------- Pallas kernel ---------------------------------
def decoder_step_kernel(src_ref, gtext_hbm, ghead_hbm, state_ref,
                        whh0_ref, wcat_ref, b_ref, wout_ref, bout_ref,
                        pred_ref, state_out_ref,
                        tbuf, hbuf, sem):
    # src_ref    : SMEM [2, B] int32 token ids
    # gtext_hbm  : HBM  [V, 4H] f32  (= emb_table @ W_ih0[:, :Ev].T + b_ih0 + b_hh0)
    # ghead_hbm  : HBM  [V, 4H] f32  (= emb_table @ W_ih0[:, Ev:].T)
    # state_ref  : VMEM [B, L*2H] f32  packed per layer as [h_l | c_l] (lane-dense)
    # whh0_ref   : VMEM [H, 4H]            (matmul dtype: f32 or bf16)
    # wcat_ref   : VMEM [max(L-1,1), 2H, 4H]  fused [W_ih; W_hh] for layers >= 1
    # b_ref      : VMEM [max(L-1,1), 4H] f32  (b_ih + b_hh, layers >= 1)
    # wout_ref   : VMEM [H, O_pad]         (matmul dtype)
    # bout_ref   : VMEM [1, O_pad] f32     (padded cols carry -1e30)
    # pred_ref   : VMEM [B, O_pad] f32
    # state_out_ref : VMEM [B, L*2H] f32 (aliased with state_ref's buffer)
    # tbuf/hbuf  : VMEM scratch [B, 4H]    DMA landing zones for the gather
    # sem        : DMA semaphores (2, B)
    batch = state_ref.shape[0]
    hid = whh0_ref.shape[0]
    n_layers = state_ref.shape[1] // (2 * hid)
    mm_dtype = whh0_ref.dtype

    # ---- Fused embedding gather: 2*B single-row DMAs straight from the HBM
    # tables into VMEM scratch (gate space, lane-dense rows).  No whole-table
    # transfer, no vector-store-slot traffic for the gather.
    copies = []
    for bb in range(batch):
        t_id = src_ref[0, bb]
        g_id = src_ref[1, bb]
        ct = pltpu.make_async_copy(gtext_hbm.at[pl.ds(t_id, 1), :],
                                   tbuf.at[pl.ds(bb, 1), :], sem.at[0, bb])
        ch = pltpu.make_async_copy(ghead_hbm.at[pl.ds(g_id, 1), :],
                                   hbuf.at[pl.ds(bb, 1), :], sem.at[1, bb])
        ct.start()
        ch.start()
        copies.append(ct)
        copies.append(ch)

    # Load the packed recurrent state while the gather DMAs are in flight.
    state = state_ref[...]                                   # [B, L*2H], one dense vld

    for cp in copies:
        cp.wait()

    # Layer-0 gate input: gathered rows already include x @ W_ih0.T and the
    # layer-0 bias.  One full-vreg add, no scratch round-trip beyond the DMA.
    gx = tbuf[...] + hbuf[...]                               # [B, 4H] f32

    new_cols = []
    x = None
    for l in range(n_layers):                                # static, small n_layers
        h_prev = state[:, (2 * l) * hid:(2 * l + 1) * hid]
        c_prev = state[:, (2 * l + 1) * hid:(2 * l + 2) * hid]
        if l == 0:
            gates = gx + jnp.dot(h_prev.astype(mm_dtype), whh0_ref[...],
                                 preferred_element_type=jnp.float32)     # [B, 4H]
        else:
            xh = jnp.concatenate([x, h_prev], axis=-1).astype(mm_dtype)  # [B, 2H]
            gates = (jnp.dot(xh, wcat_ref[l - 1],
                             preferred_element_type=jnp.float32)
                     + b_ref[l - 1:l, :])                                # [B, 4H]

        # Full-vreg EUP activations, then slice (PyTorch gate order i, f, g, o).
        sig = jax.nn.sigmoid(gates)
        tnh = jnp.tanh(gates)
        i_g = sig[:, 0 * hid:1 * hid]
        f_g = sig[:, 1 * hid:2 * hid]
        g_g = tnh[:, 2 * hid:3 * hid]
        o_g = sig[:, 3 * hid:4 * hid]

        c_new = f_g * c_prev + i_g * g_g
        h_new = o_g * jnp.tanh(c_new)
        new_cols += [h_new, c_new]
        x = h_new
        # TODO(synk): nn.LSTM inter-layer dropout applies only in train mode; eval semantics here.

    # Lane-concat the new per-layer (h, c) columns and store once, unmasked.
    state_out_ref[...] = jnp.concatenate(new_cols, axis=-1)  # [B, L*2H]

    # Output projection (lane-padded to 128) + numerically stable log-softmax.
    # Padded columns carry a -1e30 bias, so they contribute exp(..) == 0.
    logits = (jnp.dot(x.astype(wout_ref.dtype), wout_ref[...],
                      preferred_element_type=jnp.float32)
              + bout_ref[...])
    m = jnp.max(logits, axis=-1, keepdims=True)
    z = logits - m
    lse = jnp.log(jnp.sum(jnp.exp(z), axis=-1, keepdims=True))
    pred_ref[...] = z - lse                                  # LogSoftmax(dim=1)


# --------------------------- parameter preparation ----------------------------
def prepare_params(emb_table, w_ih, w_hh, b_ih, b_hh, w_out, b_out,
                   *, matmul_dtype=jnp.float32):
    """Convert PyTorch-layout weights into the kernel's fused, feature-last layout.

    matmul_dtype: dtype of the MXU operands (weights + activation casts);
    f32 for bit-exact-ish parity, bf16 for the native MXU path on v5e/v6e/v7x.
    Elementwise/EUP math and the folded tables stay f32 either way.
    """
    n_layers, four_h, _ = w_ih.shape
    H = four_h // 4
    Ev = emb_table.shape[1]
    O = w_out.shape[0]
    O_pad = ((O + 127) // 128) * 128

    w_ih_t = jnp.transpose(w_ih, (0, 2, 1)).astype(jnp.float32)   # [L, E, 4H]
    w_hh_t = jnp.transpose(w_hh, (0, 2, 1)).astype(jnp.float32)   # [L, H, 4H]
    b = (b_ih + b_hh).astype(jnp.float32)                         # [L, 4H]

    emb32 = emb_table.astype(jnp.float32)
    # Fold the layer-0 input projection AND the layer-0 bias into the tables:
    # the in-kernel token gather then lands directly in gate space.
    # Tables are [V, 4H] (no size-1 dim -> no sublane padding) and stay in HBM.
    g_text = emb32 @ w_ih_t[0, :Ev, :] + b[0][None, :]            # [V, 4H]
    g_head = emb32 @ w_ih_t[0, Ev:, :]                            # [V, 4H]

    w_hh0 = w_hh_t[0].astype(matmul_dtype)                        # [H, 4H]

    # Layers >= 1: fuse input + recurrent weights into one [2H, 4H] matrix each.
    if n_layers > 1:
        w_cat = jnp.concatenate([w_ih_t[1:], w_hh_t[1:]], axis=1)  # [L-1, 2H, 4H]
        b_rest = b[1:]                                             # [L-1, 4H]
    else:  # never read by the kernel, keep shapes non-empty
        w_cat = jnp.zeros((1, 2 * H, 4 * H), jnp.float32)
        b_rest = jnp.zeros((1, 4 * H), jnp.float32)
    w_cat = w_cat.astype(matmul_dtype)

    # Lane-dense output projection: pad output_dim up to a 128 multiple; padded
    # logits get a huge negative bias so log-softmax ignores them.
    w_out_pad = (jnp.zeros((H, O_pad), jnp.float32)
                 .at[:, :O].set(w_out.T.astype(jnp.float32))
                 .astype(matmul_dtype))
    b_out_pad = (jnp.full((1, O_pad), -1e30, jnp.float32)
                 .at[:, :O].set(b_out.astype(jnp.float32)[None, :]))

    return {
        "g_text": g_text,          # [V, 4H] f32, lives in HBM at call time
        "g_head": g_head,          # [V, 4H] f32
        "w_hh0": w_hh0,            # [H, 4H]
        "w_cat": w_cat,            # [max(L-1,1), 2H, 4H]
        "b_rest": b_rest,          # [max(L-1,1), 4H] f32
        "w_out_pad": w_out_pad,    # [H, O_pad]
        "b_out_pad": b_out_pad,    # [1, O_pad] f32
        "output_dim": int(O),
    }


# ------------------------------ wrapper ---------------------------------------
def decoder_forward(src, hidden, cell, params):
    """src: int32 [2, B]; hidden/cell: f32 [L, B, H]. Returns (log_probs, h, c).

    Only the internally packed state buffer is donated to the kernel (via
    input_output_aliases); the caller's hidden/cell arrays are left intact.
    """
    n_layers, B, H = hidden.shape
    O = params["output_dim"]
    O_pad = params["b_out_pad"].shape[1]

    # Pack (h, c) into one lane-dense [B, L*2H] buffer: per layer [h_l | c_l].
    hc = jnp.stack([hidden, cell], axis=1)                       # [L, 2, B, H]
    state = jnp.transpose(hc, (2, 0, 1, 3)).reshape(B, n_layers * 2 * H)

    vmem = pl.BlockSpec(memory_space=pltpu.MemorySpace.VMEM)
    smem = pl.BlockSpec(memory_space=pltpu.MemorySpace.SMEM)
    hbm = pl.BlockSpec(memory_space=pl.ANY)      # tables stay in HBM; kernel DMAs rows

    pred_pad, state_new = pl.pallas_call(
        decoder_step_kernel,
        out_shape=(
            jax.ShapeDtypeStruct((B, O_pad), jnp.float32),
            jax.ShapeDtypeStruct((B, n_layers * 2 * H), jnp.float32),
        ),
        in_specs=[smem, hbm, hbm, vmem, vmem, vmem, vmem, vmem, vmem],
        out_specs=(vmem, vmem),
        scratch_shapes=[
            pltpu.VMEM((B, 4 * H), jnp.float32),     # gathered text rows
            pltpu.VMEM((B, 4 * H), jnp.float32),     # gathered head rows
            pltpu.SemaphoreType.DMA((2, B)),
        ],
        # In-place state update: packed state (input 3) -> state_new (output 1).
        input_output_aliases={3: 1},
    )(src, params["g_text"], params["g_head"], state,
      params["w_hh0"], params["w_cat"], params["b_rest"],
      params["w_out_pad"], params["b_out_pad"])

    # Unpack back to the PyTorch [L, B, H] interface.
    s = state_new.reshape(B, n_layers, 2, H)
    h_new = jnp.transpose(s[:, :, 0, :], (1, 0, 2))
    c_new = jnp.transpose(s[:, :, 1, :], (1, 0, 2))
    return pred_pad[:, :O], h_new, c_new


# --------------------------- pure-JAX reference --------------------------------
def decoder_forward_ref(src, hidden, cell, emb_table,
                        w_ih, w_hh, b_ih, b_hh, w_out, b_out):
    n_layers, B, H = hidden.shape
    text_emb = jnp.take(emb_table, src[0], axis=0)
    head_emb = jnp.take(emb_table, src[1], axis=0)
    x = jnp.concatenate([text_emb, head_emb], axis=-1)
    h_out, c_out = [], []
    for l in range(n_layers):
        gates = x @ w_ih[l].T + hidden[l] @ w_hh[l].T + b_ih[l] + b_hh[l]
        i = jax.nn.sigmoid(gates[:, 0 * H:1 * H])
        f = jax.nn.sigmoid(gates[:, 1 * H:2 * H])
        g = jnp.tanh(gates[:, 2 * H:3 * H])
        o = jax.nn.sigmoid(gates[:, 3 * H:4 * H])
        c_new = f * cell[l] + i * g
        h_new = o * jnp.tanh(c_new)
        h_out.append(h_new)
        c_out.append(c_new)
        x = h_new
    logits = x @ w_out.T + b_out
    pred = jax.nn.log_softmax(logits, axis=1)
    return pred, jnp.stack(h_out), jnp.stack(c_out)


# ------------------------------- main ------------------------------------------
if __name__ == "__main__":
    key = jax.random.PRNGKey(0)
    ks = jax.random.split(key, 10)

    # Small shapes consistent with the module.
    vocab = 50
    emb_vec_dim = 16                      # pretrained_vectors.shape[1]
    H = 2 * emb_vec_dim                   # emb_src_dim = emb_dim = hid_dim = 32
    n_layers = 2
    output_dim = 24
    B = 8

    # Deterministic synthetic parameters (shapes match nn.Embedding / nn.LSTM / nn.Linear).
    emb_table = jax.random.normal(ks[0], (vocab, emb_vec_dim), jnp.float32) * 0.5
    w_ih = jax.random.normal(ks[1], (n_layers, 4 * H, H), jnp.float32) * 0.1   # PyTorch layout
    w_hh = jax.random.normal(ks[2], (n_layers, 4 * H, H), jnp.float32) * 0.1
    b_ih = jax.random.normal(ks[3], (n_layers, 4 * H), jnp.float32) * 0.1
    b_hh = jax.random.normal(ks[4], (n_layers, 4 * H), jnp.float32) * 0.1
    w_out = jax.random.normal(ks[5], (output_dim, H), jnp.float32) * 0.1       # nn.Linear layout
    b_out = jax.random.normal(ks[6], (output_dim,), jnp.float32) * 0.1

    # Inputs: src is [2, B] int token ids; hidden/cell are [L, B, H].
    src = jax.random.randint(ks[7], (2, B), 0, vocab, dtype=jnp.int32)
    hidden = jax.random.normal(ks[8], (n_layers, B, H), jnp.float32)
    cell = jax.random.normal(ks[9], (n_layers, B, H), jnp.float32)

    pred_r, h_r, c_r = jax.block_until_ready(
        decoder_forward_ref(src, hidden, cell, emb_table,
                            w_ih, w_hh, b_ih, b_hh, w_out, b_out))

    # --- f32 MXU operands: tight parity with the f32 reference.
    params_f32 = prepare_params(emb_table, w_ih, w_hh, b_ih, b_hh, w_out, b_out,
                                matmul_dtype=jnp.float32)
    pred, h_new, c_new = jax.block_until_ready(
        decoder_forward(src, hidden, cell, params_f32))

    assert pred.shape == (B, output_dim)
    assert h_new.shape == (n_layers, B, H) and c_new.shape == (n_layers, B, H)
    assert jnp.allclose(pred, pred_r, atol=1e-4, rtol=1e-4)
    assert jnp.allclose(h_new, h_r, atol=1e-4, rtol=1e-4)
    assert jnp.allclose(c_new, c_r, atol=1e-4, rtol=1e-4)

    # --- bf16 MXU operands (native MXU path, half the weight DMA bytes).
    # f32 accumulation + f32 elementwise keep the error small; tolerance is
    # loosened to account for bf16 operand rounding (per the perf review).
    params_bf16 = prepare_params(emb_table, w_ih, w_hh, b_ih, b_hh, w_out, b_out,
                                 matmul_dtype=jnp.bfloat16)
    pred_b, h_b, c_b = jax.block_until_ready(
        decoder_forward(src, hidden, cell, params_bf16))
    assert jnp.allclose(pred_b, pred_r, atol=5e-2, rtol=5e-2)
    assert jnp.allclose(h_b, h_r, atol=5e-2, rtol=5e-2)
    assert jnp.allclose(c_b, c_r, atol=5e-2, rtol=5e-2)

    print("KERNEL_OK")
</pallas_src>

<mosaic_0001>
module attributes {stable_mosaic.version = 11 : i64} {
  func.func @decoder_step_kernel(%arg0: memref<2x8xi32, #tpu.memory_space<smem>>, %arg1: memref<50x128xf32, #tpu.memory_space<any>>, %arg2: memref<50x128xf32, #tpu.memory_space<any>>, %arg3: memref<8x128xf32, #tpu.memory_space<vmem>>, %arg4: memref<32x128xf32, #tpu.memory_space<vmem>>, %arg5: memref<1x64x128xf32, #tpu.memory_space<vmem>>, %arg6: memref<1x128xf32, #tpu.memory_space<vmem>>, %arg7: memref<32x128xf32, #tpu.memory_space<vmem>>, %arg8: memref<1x128xf32, #tpu.memory_space<vmem>>, %arg9: memref<8x128xf32, #tpu.memory_space<vmem>>, %arg10: memref<8x128xf32, #tpu.memory_space<vmem>>, %arg11: memref<8x128xf32, #tpu.memory_space<vmem>>, %arg12: memref<8x128xf32, #tpu.memory_space<vmem>>, %arg13: memref<2x8x!tpu.dma_semaphore, #tpu.memory_space<semaphore_mem>>) attributes {dimension_semantics = [], scalar_prefetch = 0 : i64, scratch_operands = 3 : i64, tpu.core_type = #tpu.core_type<tc>} {
    %c0 = arith.constant 0 : index
    %c0_0 = arith.constant 0 : index
    %0 = memref.load %arg0[%c0, %c0_0] : memref<2x8xi32, #tpu.memory_space<smem>>
    %c1 = arith.constant 1 : index
    %c0_1 = arith.constant 0 : index
    %1 = memref.load %arg0[%c1, %c0_1] : memref<2x8xi32, #tpu.memory_space<smem>>
    %c0_i32 = arith.constant 0 : i32
    %c0_i32_2 = arith.constant 0 : i32
    %c0_i32_3 = arith.constant 0 : i32
    %2 = tpu.memref_slice %arg1[%0, %c0_i32_3] : memref<50x128xf32, #tpu.memory_space<any>> -> memref<1x128xf32, #tpu.memory_space<any>>
    %c0_i32_4 = arith.constant 0 : i32
    %c0_i32_5 = arith.constant 0 : i32
    %3 = tpu.memref_slice %arg11[%c0_i32_4, %c0_i32_5] : memref<8x128xf32, #tpu.memory_space<vmem>> -> memref<1x128xf32, #tpu.memory_space<vmem>>
    %4 = tpu.memref_slice %arg13[%c0_i32, %c0_i32_2] : memref<2x8x!tpu.dma_semaphore, #tpu.memory_space<semaphore_mem>> -> memref<1x1x!tpu.dma_semaphore, #tpu.memory_space<semaphore_mem>>
    %5 = tpu.memref_squeeze %4 : memref<1x1x!tpu.dma_semaphore, #tpu.memory_space<semaphore_mem>> -> memref<!tpu.dma_semaphore, #tpu.memory_space<semaphore_mem>>
    tpu.enqueue_dma source(%2 : memref<1x128xf32, #tpu.memory_space<any>>) target(%3 : memref<1x128xf32, #tpu.memory_space<vmem>>) target_semaphore(%5 : memref<!tpu.dma_semaphore, #tpu.memory_space<semaphore_mem>>)
    %c1_i32 = arith.constant 1 : i32
    %c0_i32_6 = arith.constant 0 : i32
    %c0_i32_7 = arith.constant 0 : i32
    %6 = tpu.memref_slice %arg2[%1, %c0_i32_7] : memref<50x128xf32, #tpu.memory_space<any>> -> memref<1x128xf32, #tpu.memory_space<any>>
    %c0_i32_8 = arith.constant 0 : i32
    %c0_i32_9 = arith.constant 0 : i32
    %7 = tpu.memref_slice %arg12[%c0_i32_8, %c0_i32_9] : memref<8x128xf32, #tpu.memory_space<vmem>> -> memref<1x128xf32, #tpu.memory_space<vmem>>
    %8 = tpu.memref_slice %arg13[%c1_i32, %c0_i32_6] : memref<2x8x!tpu.dma_semaphore, #tpu.memory_space<semaphore_mem>> -> memref<1x1x!tpu.dma_semaphore, #tpu.memory_space<semaphore_mem>>
    %9 = tpu.memref_squeeze %8 : memref<1x1x!tpu.dma_semaphore, #tpu.memory_space<semaphore_mem>> -> memref<!tpu.dma_semaphore, #tpu.memory_space<semaphore_mem>>
    tpu.enqueue_dma source(%6 : memref<1x128xf32, #tpu.memory_space<any>>) target(%7 : memref<1x128xf32, #tpu.memory_space<vmem>>) target_semaphore(%9 : memref<!tpu.dma_semaphore, #tpu.memory_space<semaphore_mem>>)
    %c0_10 = arith.constant 0 : index
    %c1_11 = arith.constant 1 : index
    %10 = memref.load %arg0[%c0_10, %c1_11] : memref<2x8xi32, #tpu.memory_space<smem>>
    %c1_12 = arith.constant 1 : index
    %c1_13 = arith.constant 1 : index
    %11 = memref.load %arg0[%c1_12, %c1_13] : memref<2x8xi32, #tpu.memory_space<smem>>
    %c0_i32_14 = arith.constant 0 : i32
    %c1_i32_15 = arith.constant 1 : i32
    %c0_i32_16 = arith.constant 0 : i32
    %12 = tpu.memref_slice %arg1[%10, %c0_i32_16] : memref<50x128xf32, #tpu.memory_space<any>> -> memref<1x128xf32, #tpu.memory_space<any>>
    %c1_i32_17 = arith.constant 1 : i32
    %c0_i32_18 = arith.constant 0 : i32
    %13 = tpu.memref_slice %arg11[%c1_i32_17, %c0_i32_18] : memref<8x128xf32, #tpu.memory_space<vmem>> -> memref<1x128xf32, #tpu.memory_space<vmem>>
    %14 = tpu.memref_slice %arg13[%c0_i32_14, %c1_i32_15] : memref<2x8x!tpu.dma_semaphore, #tpu.memory_space<semaphore_mem>> -> memref<1x1x!tpu.dma_semaphore, #tpu.memory_space<semaphore_mem>>
    %15 = tpu.memref_squeeze %14 : memref<1x1x!tpu.dma_semaphore, #tpu.memory_space<semaphore_mem>> -> memref<!tpu.dma_semaphore, #tpu.memory_space<semaphore_mem>>
    tpu.enqueue_dma source(%12 : memref<1x128xf32, #tpu.memory_space<any>>) target(%13 : memref<1x128xf32, #tpu.memory_space<vmem>>) target_semaphore(%15 : memref<!tpu.dma_semaphore, #tpu.memory_space<semaphore_mem>>)
    %c1_i32_19 = arith.constant 1 : i32
    %c1_i32_20 = arith.constant 1 : i32
    %c0_i32_21 = arith.constant 0 : i32
    %16 = tpu.memref_slice %arg2[%11, %c0_i32_21] : memref<50x128xf32, #tpu.memory_space<any>> -> memref<1x128xf32, #tpu.memory_space<any>>
    %c1_i32_22 = arith.constant 1 : i32
    %c0_i32_23 = arith.constant 0 : i32
    %17 = tpu.memref_slice %arg12[%c1_i32_22, %c0_i32_23] : memref<8x128xf32, #tpu.memory_space<vmem>> -> memref<1x128xf32, #tpu.memory_space<vmem>>
    %18 = tpu.memref_slice %arg13[%c1_i32_19, %c1_i32_20] : memref<2x8x!tpu.dma_semaphore, #tpu.memory_space<semaphore_mem>> -> memref<1x1x!tpu.dma_semaphore, #tpu.memory_space<semaphore_mem>>
    %19 = tpu.memref_squeeze %18 : memref<1x1x!tpu.dma_semaphore, #tpu.memory_space<semaphore_mem>> -> memref<!tpu.dma_semaphore, #tpu.memory_space<semaphore_mem>>
    tpu.enqueue_dma source(%16 : memref<1x128xf32, #tpu.memory_space<any>>) target(%17 : memref<1x128xf32, #tpu.memory_space<vmem>>) target_semaphore(%19 : memref<!tpu.dma_semaphore, #tpu.memory_space<semaphore_mem>>)
    %c0_24 = arith.constant 0 : index
    %c2 = arith.constant 2 : index
    %20 = memref.load %arg0[%c0_24, %c2] : memref<2x8xi32, #tpu.memory_space<smem>>
    %c1_25 = arith.constant 1 : index
    %c2_26 = arith.constant 2 : index
    %21 = memref.load %arg0[%c1_25, %c2_26] : memref<2x8xi32, #tpu.memory_space<smem>>
    %c0_i32_27 = arith.constant 0 : i32
    %c2_i32 = arith.constant 2 : i32
    %c0_i32_28 = arith.constant 0 : i32
    %22 = tpu.memref_slice %arg1[%20, %c0_i32_28] : memref<50x128xf32, #tpu.memory_space<any>> -> memref<1x128xf32, #tpu.memory_space<any>>
    %c2_i32_29 = arith.constant 2 : i32
    %c0_i32_30 = arith.constant 0 : i32
    %23 = tpu.memref_slice %arg11[%c2_i32_29, %c0_i32_30] : memref<8x128xf32, #tpu.memory_space<vmem>> -> memref<1x128xf32, #tpu.memory_space<vmem>>
    %24 = tpu.memref_slice %arg13[%c0_i32_27, %c2_i32] : memref<2x8x!tpu.dma_semaphore, #tpu.memory_space<semaphore_mem>> -> memref<1x1x!tpu.dma_semaphore, #tpu.memory_space<semaphore_mem>>
    %25 = tpu.memref_squeeze %24 : memref<1x1x!tpu.dma_semaphore, #tpu.memory_space<semaphore_mem>> -> memref<!tpu.dma_semaphore, #tpu.memory_space<semaphore_mem>>
    tpu.enqueue_dma source(%22 : memref<1x128xf32, #tpu.memory_space<any>>) target(%23 : memref<1x128xf32, #tpu.memory_space<vmem>>) target_semaphore(%25 : memref<!tpu.dma_semaphore, #tpu.memory_space<semaphore_mem>>)
    %c1_i32_31 = arith.constant 1 : i32
    %c2_i32_32 = arith.constant 2 : i32
    %c0_i32_33 = arith.constant 0 : i32
    %26 = tpu.memref_slice %arg2[%21, %c0_i32_33] : memref<50x128xf32, #tpu.memory_space<any>> -> memref<1x128xf32, #tpu.memory_space<any>>
    %c2_i32_34 = arith.constant 2 : i32
    %c0_i32_35 = arith.constant 0 : i32
    %27 = tpu.memref_slice %arg12[%c2_i32_34, %c0_i32_35] : memref<8x128xf32, #tpu.memory_space<vmem>> -> memref<1x128xf32, #tpu.memory_space<vmem>>
    %28 = tpu.memref_slice %arg13[%c1_i32_31, %c2_i32_32] : memref<2x8x!tpu.dma_semaphore, #tpu.memory_space<semaphore_mem>> -> memref<1x1x!tpu.dma_semaphore, #tpu.memory_space<semaphore_mem>>
    %29 = tpu.memref_squeeze %28 : memref<1x1x!tpu.dma_semaphore, #tpu.memory_space<semaphore_mem>> -> memref<!tpu.dma_semaphore, #tpu.memory_space<semaphore_mem>>
    tpu.enqueue_dma source(%26 : memref<1x128xf32, #tpu.memory_space<any>>) target(%27 : memref<1x128xf32, #tpu.memory_space<vmem>>) target_semaphore(%29 : memref<!tpu.dma_semaphore, #tpu.memory_space<semaphore_mem>>)
    %c0_36 = arith.constant 0 : index
    %c3 = arith.constant 3 : index
    %30 = memref.load %arg0[%c0_36, %c3] : memref<2x8xi32, #tpu.memory_space<smem>>
    %c1_37 = arith.constant 1 : index
    %c3_38 = arith.constant 3 : index
    %31 = memref.load %arg0[%c1_37, %c3_38] : memref<2x8xi32, #tpu.memory_space<smem>>
    %c0_i32_39 = arith.constant 0 : i32
    %c3_i32 = arith.constant 3 : i32
    %c0_i32_40 = arith.constant 0 : i32
    %32 = tpu.memref_slice %arg1[%30, %c0_i32_40] : memref<50x128xf32, #tpu.memory_space<any>> -> memref<1x128xf32, #tpu.memory_space<any>>
    %c3_i32_41 = arith.constant 3 : i32
    %c0_i32_42 = arith.constant 0 : i32
    %33 = tpu.memref_slice %arg11[%c3_i32_41, %c0_i32_42] : memref<8x128xf32, #tpu.memory_space<vmem>> -> memref<1x128xf32, #tpu.memory_space<vmem>>
    %34 = tpu.memref_slice %arg13[%c0_i32_39, %c3_i32] : memref<2x8x!tpu.dma_semaphore, #tpu.memory_space<semaphore_mem>> -> memref<1x1x!tpu.dma_semaphore, #tpu.memory_space<semaphore_mem>>
    %35 = tpu.memref_squeeze %34 : memref<1x1x!tpu.dma_semaphore, #tpu.memory_space<semaphore_mem>> -> memref<!tpu.dma_semaphore, #tpu.memory_space<semaphore_mem>>
    tpu.enqueue_dma source(%32 : memref<1x128xf32, #tpu.memory_space<any>>) target(%33 : memref<1x128xf32, #tpu.memory_space<vmem>>) target_semaphore(%35 : memref<!tpu.dma_semaphore, #tpu.memory_space<semaphore_mem>>)
    %c1_i32_43 = arith.constant 1 : i32
    %c3_i32_44 = arith.constant 3 : i32
    %c0_i32_45 = arith.constant 0 : i32
    %36 = tpu.memref_slice %arg2[%31, %c0_i32_45] : memref<50x128xf32, #tpu.memory_space<any>> -> memref<1x128xf32, #tpu.memory_space<any>>
    %c3_i32_46 = arith.constant 3 : i32
    %c0_i32_47 = arith.constant 0 : i32
    %37 = tpu.memref_slice %arg12[%c3_i32_46, %c0_i32_47] : memref<8x128xf32, #tpu.memory_space<vmem>> -> memref<1x128xf32, #tpu.memory_space<vmem>>
    %38 = tpu.memref_slice %arg13[%c1_i32_43, %c3_i32_44] : memref<2x8x!tpu.dma_semaphore, #tpu.memory_space<semaphore_mem>> -> memref<1x1x!tpu.dma_semaphore, #tpu.memory_space<semaphore_mem>>
    %39 = tpu.memref_squeeze %38 : memref<1x1x!tpu.dma_semaphore, #tpu.memory_space<semaphore_mem>> -> memref<!tpu.dma_semaphore, #tpu.memory_space<semaphore_mem>>
    tpu.enqueue_dma source(%36 : memref<1x128xf32, #tpu.memory_space<any>>) target(%37 : memref<1x128xf32, #tpu.memory_space<vmem>>) target_semaphore(%39 : memref<!tpu.dma_semaphore, #tpu.memory_space<semaphore_mem>>)
    %c0_48 = arith.constant 0 : index
    %c4 = arith.constant 4 : index
    %40 = memref.load %arg0[%c0_48, %c4] : memref<2x8xi32, #tpu.memory_space<smem>>
    %c1_49 = arith.constant 1 : index
    %c4_50 = arith.constant 4 : index
    %41 = memref.load %arg0[%c1_49, %c4_50] : memref<2x8xi32, #tpu.memory_space<smem>>
    %c0_i32_51 = arith.constant 0 : i32
    %c4_i32 = arith.constant 4 : i32
    %c0_i32_52 = arith.constant 0 : i32
    %42 = tpu.memref_slice %arg1[%40, %c0_i32_52] : memref<50x128xf32, #tpu.memory_space<any>> -> memref<1x128xf32, #tpu.memory_space<any>>
    %c4_i32_53 = arith.constant 4 : i32
    %c0_i32_54 = arith.constant 0 : i32
    %43 = tpu.memref_slice %arg11[%c4_i32_53, %c0_i32_54] : memref<8x128xf32, #tpu.memory_space<vmem>> -> memref<1x128xf32, #tpu.memory_space<vmem>>
    %44 = tpu.memref_slice %arg13[%c0_i32_51, %c4_i32] : memref<2x8x!tpu.dma_semaphore, #tpu.memory_space<semaphore_mem>> -> memref<1x1x!tpu.dma_semaphore, #tpu.memory_space<semaphore_mem>>
    %45 = tpu.memref_squeeze %44 : memref<1x1x!tpu.dma_semaphore, #tpu.memory_space<semaphore_mem>> -> memref<!tpu.dma_semaphore, #tpu.memory_space<semaphore_mem>>
    tpu.enqueue_dma source(%42 : memref<1x128xf32, #tpu.memory_space<any>>) target(%43 : memref<1x128xf32, #tpu.memory_space<vmem>>) target_semaphore(%45 : memref<!tpu.dma_semaphore, #tpu.memory_space<semaphore_mem>>)
    %c1_i32_55 = arith.constant 1 : i32
    %c4_i32_56 = arith.constant 4 : i32
    %c0_i32_57 = arith.constant 0 : i32
    %46 = tpu.memref_slice %arg2[%41, %c0_i32_57] : memref<50x128xf32, #tpu.memory_space<any>> -> memref<1x128xf32, #tpu.memory_space<any>>
    %c4_i32_58 = arith.constant 4 : i32
    %c0_i32_59 = arith.constant 0 : i32
    %47 = tpu.memref_slice %arg12[%c4_i32_58, %c0_i32_59] : memref<8x128xf32, #tpu.memory_space<vmem>> -> memref<1x128xf32, #tpu.memory_space<vmem>>
    %48 = tpu.memref_slice %arg13[%c1_i32_55, %c4_i32_56] : memref<2x8x!tpu.dma_semaphore, #tpu.memory_space<semaphore_mem>> -> memref<1x1x!tpu.dma_semaphore, #tpu.memory_space<semaphore_mem>>
    %49 = tpu.memref_squeeze %48 : memref<1x1x!tpu.dma_semaphore, #tpu.memory_space<semaphore_mem>> -> memref<!tpu.dma_semaphore, #tpu.memory_space<semaphore_mem>>
    tpu.enqueue_dma source(%46 : memref<1x128xf32, #tpu.memory_space<any>>) target(%47 : memref<1x128xf32, #tpu.memory_space<vmem>>) target_semaphore(%49 : memref<!tpu.dma_semaphore, #tpu.memory_space<semaphore_mem>>)
    %c0_60 = arith.constant 0 : index
    %c5 = arith.constant 5 : index
    %50 = memref.load %arg0[%c0_60, %c5] : memref<2x8xi32, #tpu.memory_space<smem>>
    %c1_61 = arith.constant 1 : index
    %c5_62 = arith.constant 5 : index
    %51 = memref.load %arg0[%c1_61, %c5_62] : memref<2x8xi32, #tpu.memory_space<smem>>
    %c0_i32_63 = arith.constant 0 : i32
    %c5_i32 = arith.constant 5 : i32
    %c0_i32_64 = arith.constant 0 : i32
    %52 = tpu.memref_slice %arg1[%50, %c0_i32_64] : memref<50x128xf32, #tpu.memory_space<any>> -> memref<1x128xf32, #tpu.memory_space<any>>
    %c5_i32_65 = arith.constant 5 : i32
    %c0_i32_66 = arith.constant 0 : i32
    %53 = tpu.memref_slice %arg11[%c5_i32_65, %c0_i32_66] : memref<8x128xf32, #tpu.memory_space<vmem>> -> memref<1x128xf32, #tpu.memory_space<vmem>>
    %54 = tpu.memref_slice %arg13[%c0_i32_63, %c5_i32] : memref<2x8x!tpu.dma_semaphore, #tpu.memory_space<semaphore_mem>> -> memref<1x1x!tpu.dma_semaphore, #tpu.memory_space<semaphore_mem>>
    %55 = tpu.memref_squeeze %54 : memref<1x1x!tpu.dma_semaphore, #tpu.memory_space<semaphore_mem>> -> memref<!tpu.dma_semaphore, #tpu.memory_space<semaphore_mem>>
    tpu.enqueue_dma source(%52 : memref<1x128xf32, #tpu.memory_space<any>>) target(%53 : memref<1x128xf32, #tpu.memory_space<vmem>>) target_semaphore(%55 : memref<!tpu.dma_semaphore, #tpu.memory_space<semaphore_mem>>)
    %c1_i32_67 = arith.constant 1 : i32
    %c5_i32_68 = arith.constant 5 : i32
    %c0_i32_69 = arith.constant 0 : i32
    %56 = tpu.memref_slice %arg2[%51, %c0_i32_69] : memref<50x128xf32, #tpu.memory_space<any>> -> memref<1x128xf32, #tpu.memory_space<any>>
    %c5_i32_70 = arith.constant 5 : i32
    %c0_i32_71 = arith.constant 0 : i32
    %57 = tpu.memref_slice %arg12[%c5_i32_70, %c0_i32_71] : memref<8x128xf32, #tpu.memory_space<vmem>> -> memref<1x128xf32, #tpu.memory_space<vmem>>
    %58 = tpu.memref_slice %arg13[%c1_i32_67, %c5_i32_68] : memref<2x8x!tpu.dma_semaphore, #tpu.memory_space<semaphore_mem>> -> memref<1x1x!tpu.dma_semaphore, #tpu.memory_space<semaphore_mem>>
    %59 = tpu.memref_squeeze %58 : memref<1x1x!tpu.dma_semaphore, #tpu.memory_space<semaphore_mem>> -> memref<!tpu.dma_semaphore, #tpu.memory_space<semaphore_mem>>
    tpu.enqueue_dma source(%56 : memref<1x128xf32, #tpu.memory_space<any>>) target(%57 : memref<1x128xf32, #tpu.memory_space<vmem>>) target_semaphore(%59 : memref<!tpu.dma_semaphore, #tpu.memory_space<semaphore_mem>>)
    %c0_72 = arith.constant 0 : index
    %c6 = arith.constant 6 : index
    %60 = memref.load %arg0[%c0_72, %c6] : memref<2x8xi32, #tpu.memory_space<smem>>
    %c1_73 = arith.constant 1 : index
    %c6_74 = arith.constant 6 : index
    %61 = memref.load %arg0[%c1_73, %c6_74] : memref<2x8xi32, #tpu.memory_space<smem>>
    %c0_i32_75 = arith.constant 0 : i32
    %c6_i32 = arith.constant 6 : i32
    %c0_i32_76 = arith.constant 0 : i32
    %62 = tpu.memref_slice %arg1[%60, %c0_i32_76] : memref<50x128xf32, #tpu.memory_space<any>> -> memref<1x128xf32, #tpu.memory_space<any>>
    %c6_i32_77 = arith.constant 6 : i32
    %c0_i32_78 = arith.constant 0 : i32
    %63 = tpu.memref_slice %arg11[%c6_i32_77, %c0_i32_78] : memref<8x128xf32, #tpu.memory_space<vmem>> -> memref<1x128xf32, #tpu.memory_space<vmem>>
    %64 = tpu.memref_slice %arg13[%c0_i32_75, %c6_i32] : memref<2x8x!tpu.dma_semaphore, #tpu.memory_space<semaphore_mem>> -> memref<1x1x!tpu.dma_semaphore, #tpu.memory_space<semaphore_mem>>
    %65 = tpu.memref_squeeze %64 : memref<1x1x!tpu.dma_semaphore, #tpu.memory_space<semaphore_mem>> -> memref<!tpu.dma_semaphore, #tpu.memory_space<semaphore_mem>>
    tpu.enqueue_dma source(%62 : memref<1x128xf32, #tpu.memory_space<any>>) target(%63 : memref<1x128xf32, #tpu.memory_space<vmem>>) target_semaphore(%65 : memref<!tpu.dma_semaphore, #tpu.memory_space<semaphore_mem>>)
    %c1_i32_79 = arith.constant 1 : i32
    %c6_i32_80 = arith.constant 6 : i32
    %c0_i32_81 = arith.constant 0 : i32
    %66 = tpu.memref_slice %arg2[%61, %c0_i32_81] : memref<50x128xf32, #tpu.memory_space<any>> -> memref<1x128xf32, #tpu.memory_space<any>>
    %c6_i32_82 = arith.constant 6 : i32
    %c0_i32_83 = arith.constant 0 : i32
    %67 = tpu.memref_slice %arg12[%c6_i32_82, %c0_i32_83] : memref<8x128xf32, #tpu.memory_space<vmem>> -> memref<1x128xf32, #tpu.memory_space<vmem>>
    %68 = tpu.memref_slice %arg13[%c1_i32_79, %c6_i32_80] : memref<2x8x!tpu.dma_semaphore, #tpu.memory_space<semaphore_mem>> -> memref<1x1x!tpu.dma_semaphore, #tpu.memory_space<semaphore_mem>>
    %69 = tpu.memref_squeeze %68 : memref<1x1x!tpu.dma_semaphore, #tpu.memory_space<semaphore_mem>> -> memref<!tpu.dma_semaphore, #tpu.memory_space<semaphore_mem>>
    tpu.enqueue_dma source(%66 : memref<1x128xf32, #tpu.memory_space<any>>) target(%67 : memref<1x128xf32, #tpu.memory_space<vmem>>) target_semaphore(%69 : memref<!tpu.dma_semaphore, #tpu.memory_space<semaphore_mem>>)
    %c0_84 = arith.constant 0 : index
    %c7 = arith.constant 7 : index
    %70 = memref.load %arg0[%c0_84, %c7] : memref<2x8xi32, #tpu.memory_space<smem>>
    %c1_85 = arith.constant 1 : index
    %c7_86 = arith.constant 7 : index
    %71 = memref.load %arg0[%c1_85, %c7_86] : memref<2x8xi32, #tpu.memory_space<smem>>
    %c0_i32_87 = arith.constant 0 : i32
    %c7_i32 = arith.constant 7 : i32
    %c0_i32_88 = arith.constant 0 : i32
    %72 = tpu.memref_slice %arg1[%70, %c0_i32_88] : memref<50x128xf32, #tpu.memory_space<any>> -> memref<1x128xf32, #tpu.memory_space<any>>
    %c7_i32_89 = arith.constant 7 : i32
    %c0_i32_90 = arith.constant 0 : i32
    %73 = tpu.memref_slice %arg11[%c7_i32_89, %c0_i32_90] : memref<8x128xf32, #tpu.memory_space<vmem>> -> memref<1x128xf32, #tpu.memory_space<vmem>>
    %74 = tpu.memref_slice %arg13[%c0_i32_87, %c7_i32] : memref<2x8x!tpu.dma_semaphore, #tpu.memory_space<semaphore_mem>> -> memref<1x1x!tpu.dma_semaphore, #tpu.memory_space<semaphore_mem>>
    %75 = tpu.memref_squeeze %74 : memref<1x1x!tpu.dma_semaphore, #tpu.memory_space<semaphore_mem>> -> memref<!tpu.dma_semaphore, #tpu.memory_space<semaphore_mem>>
    tpu.enqueue_dma source(%72 : memref<1x128xf32, #tpu.memory_space<any>>) target(%73 : memref<1x128xf32, #tpu.memory_space<vmem>>) target_semaphore(%75 : memref<!tpu.dma_semaphore, #tpu.memory_space<semaphore_mem>>)
    %c1_i32_91 = arith.constant 1 : i32
    %c7_i32_92 = arith.constant 7 : i32
    %c0_i32_93 = arith.constant 0 : i32
    %76 = tpu.memref_slice %arg2[%71, %c0_i32_93] : memref<50x128xf32, #tpu.memory_space<any>> -> memref<1x128xf32, #tpu.memory_space<any>>
    %c7_i32_94 = arith.constant 7 : i32
    %c0_i32_95 = arith.constant 0 : i32
    %77 = tpu.memref_slice %arg12[%c7_i32_94, %c0_i32_95] : memref<8x128xf32, #tpu.memory_space<vmem>> -> memref<1x128xf32, #tpu.memory_space<vmem>>
    %78 = tpu.memref_slice %arg13[%c1_i32_91, %c7_i32_92] : memref<2x8x!tpu.dma_semaphore, #tpu.memory_space<semaphore_mem>> -> memref<1x1x!tpu.dma_semaphore, #tpu.memory_space<semaphore_mem>>
    %79 = tpu.memref_squeeze %78 : memref<1x1x!tpu.dma_semaphore, #tpu.memory_space<semaphore_mem>> -> memref<!tpu.dma_semaphore, #tpu.memory_space<semaphore_mem>>
    tpu.enqueue_dma source(%76 : memref<1x128xf32, #tpu.memory_space<any>>) target(%77 : memref<1x128xf32, #tpu.memory_space<vmem>>) target_semaphore(%79 : memref<!tpu.dma_semaphore, #tpu.memory_space<semaphore_mem>>)
    %c0_96 = arith.constant 0 : index
    %c0_97 = arith.constant 0 : index
    %80 = vector.load %arg3[%c0_96, %c0_97] : memref<8x128xf32, #tpu.memory_space<vmem>>, vector<8x128xf32>
    %c0_i32_98 = arith.constant 0 : i32
    %c0_i32_99 = arith.constant 0 : i32
    %c0_i32_100 = arith.constant 0 : i32
    %81 = tpu.memref_slice %arg1[%0, %c0_i32_100] : memref<50x128xf32, #tpu.memory_space<any>> -> memref<1x128xf32, #tpu.memory_space<any>>
    %c0_i32_101 = arith.constant 0 : i32
    %c0_i32_102 = arith.constant 0 : i32
    %82 = tpu.memref_slice %arg11[%c0_i32_101, %c0_i32_102] : memref<8x128xf32, #tpu.memory_space<vmem>> -> memref<1x128xf32, #tpu.memory_space<vmem>>
    %83 = tpu.memref_slice %arg13[%c0_i32_98, %c0_i32_99] : memref<2x8x!tpu.dma_semaphore, #tpu.memory_space<semaphore_mem>> -> memref<1x1x!tpu.dma_semaphore, #tpu.memory_space<semaphore_mem>>
    %84 = tpu.memref_squeeze %83 : memref<1x1x!tpu.dma_semaphore, #tpu.memory_space<semaphore_mem>> -> memref<!tpu.dma_semaphore, #tpu.memory_space<semaphore_mem>>
    tpu.wait_dma2 semaphore(%84 : memref<!tpu.dma_semaphore, #tpu.memory_space<semaphore_mem>>) src(%81 : memref<1x128xf32, #tpu.memory_space<any>>) dst(%82 : memref<1x128xf32, #tpu.memory_space<vmem>>)
    %c1_i32_103 = arith.constant 1 : i32
    %c0_i32_104 = arith.constant 0 : i32
    %c0_i32_105 = arith.constant 0 : i32
    %85 = tpu.memref_slice %arg2[%1, %c0_i32_105] : memref<50x128xf32, #tpu.memory_space<any>> -> memref<1x128xf32, #tpu.memory_space<any>>
    %c0_i32_106 = arith.constant 0 : i32
    %c0_i32_107 = arith.constant 0 : i32
    %86 = tpu.memref_slice %arg12[%c0_i32_106, %c0_i32_107] : memref<8x128xf32, #tpu.memory_space<vmem>> -> memref<1x128xf32, #tpu.memory_space<vmem>>
    %87 = tpu.memref_slice %arg13[%c1_i32_103, %c0_i32_104] : memref<2x8x!tpu.dma_semaphore, #tpu.memory_space<semaphore_mem>> -> memref<1x1x!tpu.dma_semaphore, #tpu.memory_space<semaphore_mem>>
    %88 = tpu.memref_squeeze %87 : memref<1x1x!tpu.dma_semaphore, #tpu.memory_space<semaphore_mem>> -> memref<!tpu.dma_semaphore, #tpu.memory_space<semaphore_mem>>
    tpu.wait_dma2 semaphore(%88 : memref<!tpu.dma_semaphore, #tpu.memory_space<semaphore_mem>>) src(%85 : memref<1x128xf32, #tpu.memory_space<any>>) dst(%86 : memref<1x128xf32, #tpu.memory_space<vmem>>)
    %c0_i32_108 = arith.constant 0 : i32
    %c1_i32_109 = arith.constant 1 : i32
    %c0_i32_110 = arith.constant 0 : i32
    %89 = tpu.memref_slice %arg1[%10, %c0_i32_110] : memref<50x128xf32, #tpu.memory_space<any>> -> memref<1x128xf32, #tpu.memory_space<any>>
    %c1_i32_111 = arith.constant 1 : i32
    %c0_i32_112 = arith.constant 0 : i32
    %90 = tpu.memref_slice %arg11[%c1_i32_111, %c0_i32_112] : memref<8x128xf32, #tpu.memory_space<vmem>> -> memref<1x128xf32, #tpu.memory_space<vmem>>
    %91 = tpu.memref_slice %arg13[%c0_i32_108, %c1_i32_109] : memref<2x8x!tpu.dma_semaphore, #tpu.memory_space<semaphore_mem>> -> memref<1x1x!tpu.dma_semaphore, #tpu.memory_space<semaphore_mem>>
    %92 = tpu.memref_squeeze %91 : memref<1x1x!tpu.dma_semaphore, #tpu.memory_space<semaphore_mem>> -> memref<!tpu.dma_semaphore, #tpu.memory_space<semaphore_mem>>
    tpu.wait_dma2 semaphore(%92 : memref<!tpu.dma_semaphore, #tpu.memory_space<semaphore_mem>>) src(%89 : memref<1x128xf32, #tpu.memory_space<any>>) dst(%90 : memref<1x128xf32, #tpu.memory_space<vmem>>)
    %c1_i32_113 = arith.constant 1 : i32
    %c1_i32_114 = arith.constant 1 : i32
    %c0_i32_115 = arith.constant 0 : i32
    %93 = tpu.memref_slice %arg2[%11, %c0_i32_115] : memref<50x128xf32, #tpu.memory_space<any>> -> memref<1x128xf32, #tpu.memory_space<any>>
    %c1_i32_116 = arith.constant 1 : i32
    %c0_i32_117 = arith.constant 0 : i32
    %94 = tpu.memref_slice %arg12[%c1_i32_116, %c0_i32_117] : memref<8x128xf32, #tpu.memory_space<vmem>> -> memref<1x128xf32, #tpu.memory_space<vmem>>
    %95 = tpu.memref_slice %arg13[%c1_i32_113, %c1_i32_114] : memref<2x8x!tpu.dma_semaphore, #tpu.memory_space<semaphore_mem>> -> memref<1x1x!tpu.dma_semaphore, #tpu.memory_space<semaphore_mem>>
    %96 = tpu.memref_squeeze %95 : memref<1x1x!tpu.dma_semaphore, #tpu.memory_space<semaphore_mem>> -> memref<!tpu.dma_semaphore, #tpu.memory_space<semaphore_mem>>
    tpu.wait_dma2 semaphore(%96 : memref<!tpu.dma_semaphore, #tpu.memory_space<semaphore_mem>>) src(%93 : memref<1x128xf32, #tpu.memory_space<any>>) dst(%94 : memref<1x128xf32, #tpu.memory_space<vmem>>)
    %c0_i32_118 = arith.constant 0 : i32
    %c2_i32_119 = arith.constant 2 : i32
    %c0_i32_120 = arith.constant 0 : i32
    %97 = tpu.memref_slice %arg1[%20, %c0_i32_120] : memref<50x128xf32, #tpu.memory_space<any>> -> memref<1x128xf32, #tpu.memory_space<any>>
    %c2_i32_121 = arith.constant 2 : i32
    %c0_i32_122 = arith.constant 0 : i32
    %98 = tpu.memref_slice %arg11[%c2_i32_121, %c0_i32_122] : memref<8x128xf32, #tpu.memory_space<vmem>> -> memref<1x128xf32, #tpu.memory_space<vmem>>
    %99 = tpu.memref_slice %arg13[%c0_i32_118, %c2_i32_119] : memref<2x8x!tpu.dma_semaphore, #tpu.memory_space<semaphore_mem>> -> memref<1x1x!tpu.dma_semaphore, #tpu.memory_space<semaphore_mem>>
    %100 = tpu.memref_squeeze %99 : memref<1x1x!tpu.dma_semaphore, #tpu.memory_space<semaphore_mem>> -> memref<!tpu.dma_semaphore, #tpu.memory_space<semaphore_mem>>
    tpu.wait_dma2 semaphore(%100 : memref<!tpu.dma_semaphore, #tpu.memory_space<semaphore_mem>>) src(%97 : memref<1x128xf32, #tpu.memory_space<any>>) dst(%98 : memref<1x128xf32, #tpu.memory_space<vmem>>)
    %c1_i32_123 = arith.constant 1 : i32
    %c2_i32_124 = arith.constant 2 : i32
    %c0_i32_125 = arith.constant 0 : i32
    %101 = tpu.memref_slice %arg2[%21, %c0_i32_125] : memref<50x128xf32, #tpu.memory_space<any>> -> memref<1x128xf32, #tpu.memory_space<any>>
    %c2_i32_126 = arith.constant 2 : i32
    %c0_i32_127 = arith.constant 0 : i32
    %102 = tpu.memref_slice %arg12[%c2_i32_126, %c0_i32_127] : memref<8x128xf32, #tpu.memory_space<vmem>> -> memref<1x128xf32, #tpu.memory_space<vmem>>
    %103 = tpu.memref_slice %arg13[%c1_i32_123, %c2_i32_124] : memref<2x8x!tpu.dma_semaphore, #tpu.memory_space<semaphore_mem>> -> memref<1x1x!tpu.dma_semaphore, #tpu.memory_space<semaphore_mem>>
    %104 = tpu.memref_squeeze %103 : memref<1x1x!tpu.dma_semaphore, #tpu.memory_space<semaphore_mem>> -> memref<!tpu.dma_semaphore, #tpu.memory_space<semaphore_mem>>
    tpu.wait_dma2 semaphore(%104 : memref<!tpu.dma_semaphore, #tpu.memory_space<semaphore_mem>>) src(%101 : memref<1x128xf32, #tpu.memory_space<any>>) dst(%102 : memref<1x128xf32, #tpu.memory_space<vmem>>)
    %c0_i32_128 = arith.constant 0 : i32
    %c3_i32_129 = arith.constant 3 : i32
    %c0_i32_130 = arith.constant 0 : i32
    %105 = tpu.memref_slice %arg1[%30, %c0_i32_130] : memref<50x128xf32, #tpu.memory_space<any>> -> memref<1x128xf32, #tpu.memory_space<any>>
    %c3_i32_131 = arith.constant 3 : i32
    %c0_i32_132 = arith.constant 0 : i32
    %106 = tpu.memref_slice %arg11[%c3_i32_131, %c0_i32_132] : memref<8x128xf32, #tpu.memory_space<vmem>> -> memref<1x128xf32, #tpu.memory_space<vmem>>
    %107 = tpu.memref_slice %arg13[%c0_i32_128, %c3_i32_129] : memref<2x8x!tpu.dma_semaphore, #tpu.memory_space<semaphore_mem>> -> memref<1x1x!tpu.dma_semaphore, #tpu.memory_space<semaphore_mem>>
    %108 = tpu.memref_squeeze %107 : memref<1x1x!tpu.dma_semaphore, #tpu.memory_space<semaphore_mem>> -> memref<!tpu.dma_semaphore, #tpu.memory_space<semaphore_mem>>
    tpu.wait_dma2 semaphore(%108 : memref<!tpu.dma_semaphore, #tpu.memory_space<semaphore_mem>>) src(%105 : memref<1x128xf32, #tpu.memory_space<any>>) dst(%106 : memref<1x128xf32, #tpu.memory_space<vmem>>)
    %c1_i32_133 = arith.constant 1 : i32
    %c3_i32_134 = arith.constant 3 : i32
    %c0_i32_135 = arith.constant 0 : i32
    %109 = tpu.memref_slice %arg2[%31, %c0_i32_135] : memref<50x128xf32, #tpu.memory_space<any>> -> memref<1x128xf32, #tpu.memory_space<any>>
    %c3_i32_136 = arith.constant 3 : i32
    %c0_i32_137 = arith.constant 0 : i32
    %110 = tpu.memref_slice %arg12[%c3_i32_136, %c0_i32_137] : memref<8x128xf32, #tpu.memory_space<vmem>> -> memref<1x128xf32, #tpu.memory_space<vmem>>
    %111 = tpu.memref_slice %arg13[%c1_i32_133, %c3_i32_134] : memref<2x8x!tpu.dma_semaphore, #tpu.memory_space<semaphore_mem>> -> memref<1x1x!tpu.dma_semaphore, #tpu.memory_space<semaphore_mem>>
    %112 = tpu.memref_squeeze %111 : memref<1x1x!tpu.dma_semaphore, #tpu.memory_space<semaphore_mem>> -> memref<!tpu.dma_semaphore, #tpu.memory_space<semaphore_mem>>
    tpu.wait_dma2 semaphore(%112 : memref<!tpu.dma_semaphore, #tpu.memory_space<semaphore_mem>>) src(%109 : memref<1x128xf32, #tpu.memory_space<any>>) dst(%110 : memref<1x128xf32, #tpu.memory_space<vmem>>)
    %c0_i32_138 = arith.constant 0 : i32
    %c4_i32_139 = arith.constant 4 : i32
    %c0_i32_140 = arith.constant 0 : i32
    %113 = tpu.memref_slice %arg1[%40, %c0_i32_140] : memref<50x128xf32, #tpu.memory_space<any>> -> memref<1x128xf32, #tpu.memory_space<any>>
    %c4_i32_141 = arith.constant 4 : i32
    %c0_i32_142 = arith.constant 0 : i32
    %114 = tpu.memref_slice %arg11[%c4_i32_141, %c0_i32_142] : memref<8x128xf32, #tpu.memory_space<vmem>> -> memref<1x128xf32, #tpu.memory_space<vmem>>
    %115 = tpu.memref_slice %arg13[%c0_i32_138, %c4_i32_139] : memref<2x8x!tpu.dma_semaphore, #tpu.memory_space<semaphore_mem>> -> memref<1x1x!tpu.dma_semaphore, #tpu.memory_space<semaphore_mem>>
    %116 = tpu.memref_squeeze %115 : memref<1x1x!tpu.dma_semaphore, #tpu.memory_space<semaphore_mem>> -> memref<!tpu.dma_semaphore, #tpu.memory_space<semaphore_mem>>
    tpu.wait_dma2 semaphore(%116 : memref<!tpu.dma_semaphore, #tpu.memory_space<semaphore_mem>>) src(%113 : memref<1x128xf32, #tpu.memory_space<any>>) dst(%114 : memref<1x128xf32, #tpu.memory_space<vmem>>)
    %c1_i32_143 = arith.constant 1 : i32
    %c4_i32_144 = arith.constant 4 : i32
    %c0_i32_145 = arith.constant 0 : i32
    %117 = tpu.memref_slice %arg2[%41, %c0_i32_145] : memref<50x128xf32, #tpu.memory_space<any>> -> memref<1x128xf32, #tpu.memory_space<any>>
    %c4_i32_146 = arith.constant 4 : i32
    %c0_i32_147 = arith.constant 0 : i32
    %118 = tpu.memref_slice %arg12[%c4_i32_146, %c0_i32_147] : memref<8x128xf32, #tpu.memory_space<vmem>> -> memref<1x128xf32, #tpu.memory_space<vmem>>
    %119 = tpu.memref_slice %arg13[%c1_i32_143, %c4_i32_144] : memref<2x8x!tpu.dma_semaphore, #tpu.memory_space<semaphore_mem>> -> memref<1x1x!tpu.dma_semaphore, #tpu.memory_space<semaphore_mem>>
    %120 = tpu.memref_squeeze %119 : memref<1x1x!tpu.dma_semaphore, #tpu.memory_space<semaphore_mem>> -> memref<!tpu.dma_semaphore, #tpu.memory_space<semaphore_mem>>
    tpu.wait_dma2 semaphore(%120 : memref<!tpu.dma_semaphore, #tpu.memory_space<semaphore_mem>>) src(%117 : memref<1x128xf32, #tpu.memory_space<any>>) dst(%118 : memref<1x128xf32, #tpu.memory_space<vmem>>)
    %c0_i32_148 = arith.constant 0 : i32
    %c5_i32_149 = arith.constant 5 : i32
    %c0_i32_150 = arith.constant 0 : i32
    %121 = tpu.memref_slice %arg1[%50, %c0_i32_150] : memref<50x128xf32, #tpu.memory_space<any>> -> memref<1x128xf32, #tpu.memory_space<any>>
    %c5_i32_151 = arith.constant 5 : i32
    %c0_i32_152 = arith.constant 0 : i32
    %122 = tpu.memref_slice %arg11[%c5_i32_151, %c0_i32_152] : memref<8x128xf32, #tpu.memory_space<vmem>> -> memref<1x128xf32, #tpu.memory_space<vmem>>
    %123 = tpu.memref_slice %arg13[%c0_i32_148, %c5_i32_149] : memref<2x8x!tpu.dma_semaphore, #tpu.memory_space<semaphore_mem>> -> memref<1x1x!tpu.dma_semaphore, #tpu.memory_space<semaphore_mem>>
    %124 = tpu.memref_squeeze %123 : memref<1x1x!tpu.dma_semaphore, #tpu.memory_space<semaphore_mem>> -> memref<!tpu.dma_semaphore, #tpu.memory_space<semaphore_mem>>
    tpu.wait_dma2 semaphore(%124 : memref<!tpu.dma_semaphore, #tpu.memory_space<semaphore_mem>>) src(%121 : memref<1x128xf32, #tpu.memory_space<any>>) dst(%122 : memref<1x128xf32, #tpu.memory_space<vmem>>)
    %c1_i32_153 = arith.constant 1 : i32
    %c5_i32_154 = arith.constant 5 : i32
    %c0_i32_155 = arith.constant 0 : i32
    %125 = tpu.memref_slice %arg2[%51, %c0_i32_155] : memref<50x128xf32, #tpu.memory_space<any>> -> memref<1x128xf32, #tpu.memory_space<any>>
    %c5_i32_156 = arith.constant 5 : i32
    %c0_i32_157 = arith.constant 0 : i32
    %126 = tpu.memref_slice %arg12[%c5_i32_156, %c0_i32_157] : memref<8x128xf32, #tpu.memory_space<vmem>> -> memref<1x128xf32, #tpu.memory_space<vmem>>
    %127 = tpu.memref_slice %arg13[%c1_i32_153, %c5_i32_154] : memref<2x8x!tpu.dma_semaphore, #tpu.memory_space<semaphore_mem>> -> memref<1x1x!tpu.dma_semaphore, #tpu.memory_space<semaphore_mem>>
    %128 = tpu.memref_squeeze %127 : memref<1x1x!tpu.dma_semaphore, #tpu.memory_space<semaphore_mem>> -> memref<!tpu.dma_semaphore, #tpu.memory_space<semaphore_mem>>
    tpu.wait_dma2 semaphore(%128 : memref<!tpu.dma_semaphore, #tpu.memory_space<semaphore_mem>>) src(%125 : memref<1x128xf32, #tpu.memory_space<any>>) dst(%126 : memref<1x128xf32, #tpu.memory_space<vmem>>)
    %c0_i32_158 = arith.constant 0 : i32
    %c6_i32_159 = arith.constant 6 : i32
    %c0_i32_160 = arith.constant 0 : i32
    %129 = tpu.memref_slice %arg1[%60, %c0_i32_160] : memref<50x128xf32, #tpu.memory_space<any>> -> memref<1x128xf32, #tpu.memory_space<any>>
    %c6_i32_161 = arith.constant 6 : i32
    %c0_i32_162 = arith.constant 0 : i32
    %130 = tpu.memref_slice %arg11[%c6_i32_161, %c0_i32_162] : memref<8x128xf32, #tpu.memory_space<vmem>> -> memref<1x128xf32, #tpu.memory_space<vmem>>
    %131 = tpu.memref_slice %arg13[%c0_i32_158, %c6_i32_159] : memref<2x8x!tpu.dma_semaphore, #tpu.memory_space<semaphore_mem>> -> memref<1x1x!tpu.dma_semaphore, #tpu.memory_space<semaphore_mem>>
    %132 = tpu.memref_squeeze %131 : memref<1x1x!tpu.dma_semaphore, #tpu.memory_space<semaphore_mem>> -> memref<!tpu.dma_semaphore, #tpu.memory_space<semaphore_mem>>
    tpu.wait_dma2 semaphore(%132 : memref<!tpu.dma_semaphore, #tpu.memory_space<semaphore_mem>>) src(%129 : memref<1x128xf32, #tpu.memory_space<any>>) dst(%130 : memref<1x128xf32, #tpu.memory_space<vmem>>)
    %c1_i32_163 = arith.constant 1 : i32
    %c6_i32_164 = arith.constant 6 : i32
    %c0_i32_165 = arith.constant 0 : i32
    %133 = tpu.memref_slice %arg2[%61, %c0_i32_165] : memref<50x128xf32, #tpu.memory_space<any>> -> memref<1x128xf32, #tpu.memory_space<any>>
    %c6_i32_166 = arith.constant 6 : i32
    %c0_i32_167 = arith.constant 0 : i32
    %134 = tpu.memref_slice %arg12[%c6_i32_166, %c0_i32_167] : memref<8x128xf32, #tpu.memory_space<vmem>> -> memref<1x128xf32, #tpu.memory_space<vmem>>
    %135 = tpu.memref_slice %arg13[%c1_i32_163, %c6_i32_164] : memref<2x8x!tpu.dma_semaphore, #tpu.memory_space<semaphore_mem>> -> memref<1x1x!tpu.dma_semaphore, #tpu.memory_space<semaphore_mem>>
    %136 = tpu.memref_squeeze %135 : memref<1x1x!tpu.dma_semaphore, #tpu.memory_space<semaphore_mem>> -> memref<!tpu.dma_semaphore, #tpu.memory_space<semaphore_mem>>
    tpu.wait_dma2 semaphore(%136 : memref<!tpu.dma_semaphore, #tpu.memory_space<semaphore_mem>>) src(%133 : memref<1x128xf32, #tpu.memory_space<any>>) dst(%134 : memref<1x128xf32, #tpu.memory_space<vmem>>)
    %c0_i32_168 = arith.constant 0 : i32
    %c7_i32_169 = arith.constant 7 : i32
    %c0_i32_170 = arith.constant 0 : i32
    %137 = tpu.memref_slice %arg1[%70, %c0_i32_170] : memref<50x128xf32, #tpu.memory_space<any>> -> memref<1x128xf32, #tpu.memory_space<any>>
    %c7_i32_171 = arith.constant 7 : i32
    %c0_i32_172 = arith.constant 0 : i32
    %138 = tpu.memref_slice %arg11[%c7_i32_171, %c0_i32_172] : memref<8x128xf32, #tpu.memory_space<vmem>> -> memref<1x128xf32, #tpu.memory_space<vmem>>
    %139 = tpu.memref_slice %arg13[%c0_i32_168, %c7_i32_169] : memref<2x8x!tpu.dma_semaphore, #tpu.memory_space<semaphore_mem>> -> memref<1x1x!tpu.dma_semaphore, #tpu.memory_space<semaphore_mem>>
    %140 = tpu.memref_squeeze %139 : memref<1x1x!tpu.dma_semaphore, #tpu.memory_space<semaphore_mem>> -> memref<!tpu.dma_semaphore, #tpu.memory_space<semaphore_mem>>
    tpu.wait_dma2 semaphore(%140 : memref<!tpu.dma_semaphore, #tpu.memory_space<semaphore_mem>>) src(%137 : memref<1x128xf32, #tpu.memory_space<any>>) dst(%138 : memref<1x128xf32, #tpu.memory_space<vmem>>)
    %c1_i32_173 = arith.constant 1 : i32
    %c7_i32_174 = arith.constant 7 : i32
    %c0_i32_175 = arith.constant 0 : i32
    %141 = tpu.memref_slice %arg2[%71, %c0_i32_175] : memref<50x128xf32, #tpu.memory_space<any>> -> memref<1x128xf32, #tpu.memory_space<any>>
    %c7_i32_176 = arith.constant 7 : i32
    %c0_i32_177 = arith.constant 0 : i32
    %142 = tpu.memref_slice %arg12[%c7_i32_176, %c0_i32_177] : memref<8x128xf32, #tpu.memory_space<vmem>> -> memref<1x128xf32, #tpu.memory_space<vmem>>
    %143 = tpu.memref_slice %arg13[%c1_i32_173, %c7_i32_174] : memref<2x8x!tpu.dma_semaphore, #tpu.memory_space<semaphore_mem>> -> memref<1x1x!tpu.dma_semaphore, #tpu.memory_space<semaphore_mem>>
    %144 = tpu.memref_squeeze %143 : memref<1x1x!tpu.dma_semaphore, #tpu.memory_space<semaphore_mem>> -> memref<!tpu.dma_semaphore, #tpu.memory_space<semaphore_mem>>
    tpu.wait_dma2 semaphore(%144 : memref<!tpu.dma_semaphore, #tpu.memory_space<semaphore_mem>>) src(%141 : memref<1x128xf32, #tpu.memory_space<any>>) dst(%142 : memref<1x128xf32, #tpu.memory_space<vmem>>)
    %c0_178 = arith.constant 0 : index
    %c0_179 = arith.constant 0 : index
    %145 = vector.load %arg11[%c0_178, %c0_179] : memref<8x128xf32, #tpu.memory_space<vmem>>, vector<8x128xf32>
    %c0_180 = arith.constant 0 : index
    %c0_181 = arith.constant 0 : index
    %146 = vector.load %arg12[%c0_180, %c0_181] : memref<8x128xf32, #tpu.memory_space<vmem>>, vector<8x128xf32>
    %147 = arith.addf %145, %146 : vector<8x128xf32>
    %148 = vector.extract_strided_slice %80 {offsets = [0, 0], sizes = [8, 32], strides = [1, 1]} : vector<8x128xf32> to vector<8x32xf32>
    %149 = vector.extract_strided_slice %80 {offsets = [0, 32], sizes = [8, 32], strides = [1, 1]} : vector<8x128xf32> to vector<8x32xf32>
    %c0_182 = arith.constant 0 : index
    %c0_183 = arith.constant 0 : index
    %150 = vector.load %arg4[%c0_182, %c0_183] : memref<32x128xf32, #tpu.memory_space<vmem>>, vector<32x128xf32>
    %cst = arith.constant dense<0.000000e+00> : vector<8x128xf32>
    %151 = tpu.matmul %148, %150, %cst {dimension_numbers = #tpu.dot_dimension_numbers<[1], [0], [0], [1], [0, 0, 1, 1], [], []>} : vector<8x32xf32>, vector<32x128xf32>, vector<8x128xf32> -> vector<8x128xf32>
    %152 = arith.addf %147, %151 : vector<8x128xf32>
    %153 = arith.negf %152 : vector<8x128xf32>
    %154 = math.exp %153 : vector<8x128xf32>
    %cst_184 = arith.constant 1.000000e+00 : f32
    %155 = vector.broadcast %cst_184 : f32 to vector<8x128xf32>
    %156 = arith.addf %155, %154 : vector<8x128xf32>
    %157 = arith.divf %155, %156 : vector<8x128xf32>
    %158 = math.tanh %152 : vector<8x128xf32>
    %159 = vector.extract_strided_slice %157 {offsets = [0, 0], sizes = [8, 32], strides = [1, 1]} : vector<8x128xf32> to vector<8x32xf32>
    %160 = vector.extract_strided_slice %157 {offsets = [0, 32], sizes = [8, 32], strides = [1, 1]} : vector<8x128xf32> to vector<8x32xf32>
    %161 = vector.extract_strided_slice %158 {offsets = [0, 64], sizes = [8, 32], strides = [1, 1]} : vector<8x128xf32> to vector<8x32xf32>
    %162 = vector.extract_strided_slice %157 {offsets = [0, 96], sizes = [8, 32], strides = [1, 1]} : vector<8x128xf32> to vector<8x32xf32>
    %163 = arith.mulf %160, %149 : vector<8x32xf32>
    %164 = arith.mulf %159, %161 : vector<8x32xf32>
    %165 = arith.addf %163, %164 : vector<8x32xf32>
    %166 = math.tanh %165 : vector<8x32xf32>
    %167 = arith.mulf %162, %166 : vector<8x32xf32>
    %168 = vector.extract_strided_slice %80 {offsets = [0, 64], sizes = [8, 32], strides = [1, 1]} : vector<8x128xf32> to vector<8x32xf32>
    %169 = vector.extract_strided_slice %80 {offsets = [0, 96], sizes = [8, 32], strides = [1, 1]} : vector<8x128xf32> to vector<8x32xf32>
    %170 = tpu.concatenate %167, %168 in 1 : vector<8x32xf32>, vector<8x32xf32> -> vector<8x64xf32>
    %c0_185 = arith.constant 0 : index
    %c0_186 = arith.constant 0 : index
    %c0_187 = arith.constant 0 : index
    %171 = vector.load %arg5[%c0_185, %c0_186, %c0_187] : memref<1x64x128xf32, #tpu.memory_space<vmem>>, vector<1x64x128xf32>
    %172 = vector.shape_cast %171 : vector<1x64x128xf32> to vector<64x128xf32>
    %cst_188 = arith.constant dense<0.000000e+00> : vector<8x128xf32>
    %173 = tpu.matmul %170, %172, %cst_188 {dimension_numbers = #tpu.dot_dimension_numbers<[1], [0], [0], [1], [0, 0, 1, 1], [], []>} : vector<8x64xf32>, vector<64x128xf32>, vector<8x128xf32> -> vector<8x128xf32>
    %c0_189 = arith.constant 0 : index
    %c0_190 = arith.constant 0 : index
    %174 = vector.load %arg6[%c0_189, %c0_190] : memref<1x128xf32, #tpu.memory_space<vmem>>, vector<1x128xf32>
    %175 = vector.broadcast %174 : vector<1x128xf32> to vector<8x128xf32>
    %176 = arith.addf %173, %175 : vector<8x128xf32>
    %177 = arith.negf %176 : vector<8x128xf32>
    %178 = math.exp %177 : vector<8x128xf32>
    %cst_191 = arith.constant 1.000000e+00 : f32
    %179 = vector.broadcast %cst_191 : f32 to vector<8x128xf32>
    %180 = arith.addf %179, %178 : vector<8x128xf32>
    %181 = arith.divf %179, %180 : vector<8x128xf32>
    %182 = math.tanh %176 : vector<8x128xf32>
    %183 = vector.extract_strided_slice %181 {offsets = [0, 0], sizes = [8, 32], strides = [1, 1]} : vector<8x128xf32> to vector<8x32xf32>
    %184 = vector.extract_strided_slice %181 {offsets = [0, 32], sizes = [8, 32], strides = [1, 1]} : vector<8x128xf32> to vector<8x32xf32>
    %185 = vector.extract_strided_slice %182 {offsets = [0, 64], sizes = [8, 32], strides = [1, 1]} : vector<8x128xf32> to vector<8x32xf32>
    %186 = vector.extract_strided_slice %181 {offsets = [0, 96], sizes = [8, 32], strides = [1, 1]} : vector<8x128xf32> to vector<8x32xf32>
    %187 = arith.mulf %184, %169 : vector<8x32xf32>
    %188 = arith.mulf %183, %185 : vector<8x32xf32>
    %189 = arith.addf %187, %188 : vector<8x32xf32>
    %190 = math.tanh %189 : vector<8x32xf32>
    %191 = arith.mulf %186, %190 : vector<8x32xf32>
    %192 = tpu.concatenate %167, %165, %191, %189 in 1 : vector<8x32xf32>, vector<8x32xf32>, vector<8x32xf32>, vector<8x32xf32> -> vector<8x128xf32>
    %c0_192 = arith.constant 0 : index
    %c0_193 = arith.constant 0 : index
    %193 = vector.load %arg10[%c0_192, %c0_193] : memref<8x128xf32, #tpu.memory_space<vmem>>, vector<8x128xf32>
    tpu.vector_store %arg10[%c0_192, %c0_193], %192 {strides = array<i32>} : memref<8x128xf32, #tpu.memory_space<vmem>>, vector<8x128xf32>,
    %c0_194 = arith.constant 0 : index
    %c0_195 = arith.constant 0 : index
    %194 = vector.load %arg7[%c0_194, %c0_195] : memref<32x128xf32, #tpu.memory_space<vmem>>, vector<32x128xf32>
    %cst_196 = arith.constant dense<0.000000e+00> : vector<8x128xf32>
    %195 = tpu.matmul %191, %194, %cst_196 {dimension_numbers = #tpu.dot_dimension_numbers<[1], [0], [0], [1], [0, 0, 1, 1], [], []>} : vector<8x32xf32>, vector<32x128xf32>, vector<8x128xf32> -> vector<8x128xf32>
    %c0_197 = arith.constant 0 : index
    %c0_198 = arith.constant 0 : index
    %196 = vector.load %arg8[%c0_197, %c0_198] : memref<1x128xf32, #tpu.memory_space<vmem>>, vector<1x128xf32>
    %197 = vector.broadcast %196 : vector<1x128xf32> to vector<8x128xf32>
    %198 = arith.addf %195, %197 : vector<8x128xf32>
    %cst_199 = arith.constant dense<0xFF800000> : vector<8xf32>
    %199 = vector.multi_reduction <maximumf>, %198, %cst_199 [1] : vector<8x128xf32> to vector<8xf32>
    %200 = vector.shape_cast %199 : vector<8xf32> to vector<8x1xf32>
    %201 = vector.broadcast %200 : vector<8x1xf32> to vector<8x128xf32>
    %202 = arith.subf %198, %201 : vector<8x128xf32>
    %203 = math.exp %202 : vector<8x128xf32>
    %cst_200 = arith.constant dense<0.000000e+00> : vector<8xf32>
    %204 = vector.multi_reduction <add>, %203, %cst_200 [1] : vector<8x128xf32> to vector<8xf32>
    %205 = vector.shape_cast %204 : vector<8xf32> to vector<8x1xf32>
    %206 = math.log %205 : vector<8x1xf32>
    %207 = vector.broadcast %206 : vector<8x1xf32> to vector<8x128xf32>
    %208 = arith.subf %202, %207 : vector<8x128xf32>
    %c0_201 = arith.constant 0 : index
    %c0_202 = arith.constant 0 : index
    %209 = vector.load %arg9[%c0_201, %c0_202] : memref<8x128xf32, #tpu.memory_space<vmem>>, vector<8x128xf32>
    tpu.vector_store %arg9[%c0_201, %c0_202], %208 {strides = array<i32>} : memref<8x128xf32, #tpu.memory_space<vmem>>, vector<8x128xf32>,
    return
  }
}

</mosaic_0001>

<bundles_post_ra>
// kernel: tpu_custom_call.1
= control target key start
LH: loop header
LB: loop body
LE: loop exit
PB: predicated region body
PF: predicated region fallthrough
CT: control target
= control target key end

     0   :  { %16 = vsyncpa [#allocation8], 0  ;;  %s2009_s0 = inlined_call_operand.vmem [shape: s32[2,8], index: 0, kind: input, shape index: {}]   ;;  %s2010_s1 = inlined_call_operand.hbm [shape: f32[50,128], index: 1, kind: input, shape index: {}]   ;;  %s2011_s2 = inlined_call_operand.hbm [shape: f32[50,128], index: 2, kind: input, shape index: {}]   ;;  %s2012_s3 = inlined_call_operand.hbm [shape: f32[8,128], index: 3, kind: input, shape index: {}, may-alias: {3,10}]   ;;  %s2013_s4 = inlined_call_operand.hbm [shape: f32[32,128], index: 4, kind: input, shape index: {}]   ;;  %s2014_s5 = inlined_call_operand.hbm [shape: f32[1,64,128], index: 5, kind: input, shape index: {}]   ;;  %s2015_s6 = inlined_call_operand.vmem [shape: f32[1,128], index: 6, kind: input, shape index: {}]   ;;  %s2016_s7 = inlined_call_operand.hbm [shape: f32[32,128], index: 7, kind: input, shape index: {}]   ;;  %s2017_s8 = inlined_call_operand.vmem [shape: f32[1,128], index: 8, kind: input, shape index: {}]   ;;  %s2018_s9 = inlined_call_operand.hbm [shape: f32[8,128], index: 9, kind: output, shape index: {0}]   ;;  %s2019_s10 = inlined_call_operand.hbm [shape: f32[8,128], index: 10, kind: output, shape index: {1}, may-alias: {3,10}]  }
   0x1   :  { %17 = vsyncpa [#allocation6], 0 }
   0x2   :  { %18 = vsyncpa [#allocation11], 0 }
   0x3   :  { %19 = vsyncpa [#allocation14], 0 }
   0x4   :  { %20 = vsyncpa [#allocation7], 0 }
   0x5   :  { %21 = vsyncpa [#allocation17], 0  ;;  %s1591_s13 = smov [#allocation10]   ;;  %s28_s17 = sshll.u32 %s2009_s0, 4  ;;  %s29_s17 = int_to_ptr.vmem [resolvable:$true] %s28_s17 }
   0x6   :  { %s47_s14 = sshll.u32 %s1591_s13, 4  ;;  %s48_s14 = int_to_ptr.vmem [resolvable:$true] %s47_s14 }
   0x7   :  { %s1071_s18 = scalar_lea.vmem %s48_s14, 512  ;;  %p1076_p1 = scmp.lt.s32.totalorder %s48_s14, %s48_s14 }
   0x8   :  { %p1072_p0 = scmp.ne.s32.totalorder %s48_s14, %s1071_s18  ;;  %p1077_p2 = scmp.lt.s32.totalorder %s1071_s18, %s1071_s18 }
   0xa   :  { %p1078_p3 = por %p1077_p2, %p1076_p1 }
   0xc   :  { %p1079_p4 = pnand %p1078_p3, %p1072_p0 }
   0xe   :  { %1082 = shalt.err (!%p1079_p4)
}
   0xf   :  { %s1592_s19 = smov 128   ;;  %s1593_s20 = smov 8  }
  0x10   :  { %53 = dma.hbm_to_vmem [thread:$0]  %s2013_s4, 512, %s48_s14, [#allocation11], %s1592_s19, %s1592_s19, %s1593_s20  }
  0x11   :  { %s1083_s23 = scalar_lea.vmem %s29_s17, 32  ;;  %p1088_p6 = scmp.lt.s32.totalorder %s29_s17, %s29_s17 }
  0x12   :  { %p1084_p5 = scmp.ne.s32.totalorder %s29_s17, %s1083_s23  ;;  %p1089_p7 = scmp.lt.s32.totalorder %s1083_s23, %s1083_s23 }
  0x14   :  { %p1090_p8 = por %p1089_p7, %p1088_p6 }
  0x16   :  { %p1091_p9 = pnand %p1090_p8, %p1084_p5 }
  0x18   :  { %1094 = shalt.err (!%p1091_p9)
}
  0x19   :  { %s1594_s0 = smov [#allocation5]   ;;  %s1595_s24 = smov [#allocation9]  }
  0x1a   :  { %31 = dma.vmem_to_smem %s29_s17, 32, %s1594_s0, [#allocation8]  }
  0x1b   :  { %s38_s25 = sshll.u32 %s1595_s24, 4  ;;  %s1596_s26 = smov [#allocation12]   ;;  %s39_s25 = int_to_ptr.vmem [resolvable:$true] %s38_s25 }
  0x1c   :  { %s59_s27 = sshll.u32 %s1596_s26, 4  ;;  %s1103_s28 = scalar_lea.vmem %s39_s25, 128  ;;  %s60_s27 = int_to_ptr.vmem [resolvable:$true] %s59_s27 }
  0x1d   :  { %p1104_p10 = scmp.ne.s32.totalorder %s39_s25, %s1103_s28  ;;  %p1108_p11 = scmp.lt.s32.totalorder %s39_s25, %s39_s25 }
  0x1e   :  { %p1109_p12 = scmp.lt.s32.totalorder %s1103_s28, %s1103_s28 }
  0x20   :  { %p1110_p13 = por %p1109_p12, %p1108_p11 }
  0x22   :  { %p1111_p0 = pnand %p1110_p13, %p1104_p10 }
  0x24   :  { %1114 = shalt.err (!%p1111_p0)
}
  0x25   :  { %41 = dma.hbm_to_vmem [thread:$0]  %s2012_s3, 128, %s39_s25, [#allocation6]  }
  0x26   :  { %s1123_s30 = scalar_lea.vmem %s60_s27, 1024  ;;  %p1128_p2 = scmp.lt.s32.totalorder %s60_s27, %s60_s27 }
  0x27   :  { %p1124_p1 = scmp.ne.s32.totalorder %s60_s27, %s1123_s30  ;;  %p1129_p3 = scmp.lt.s32.totalorder %s1123_s30, %s1123_s30 }
  0x29   :  { %p1130_p4 = por %p1129_p3, %p1128_p2 }
  0x2b   :  { %p1131_p5 = pnand %p1130_p4, %p1124_p1 }
  0x2d   :  { %1134 = shalt.err (!%p1131_p5)
}
  0x2e   :  { %65 = dma.hbm_to_vmem [thread:$0]  %s2014_s5, 1024, %s60_s27, [#allocation11], %s1592_s19, %s1592_s19, %s1593_s20  }
  0x2f   :  { %s1597_s13 = smov [#allocation13]  }
  0x30   :  { %s73_s14 = sshll.u32 %s1597_s13, 4  ;;  %s74_s14 = int_to_ptr.vmem [resolvable:$true] %s73_s14 }
  0x31   :  { %s1143_s15 = scalar_lea.vmem %s74_s14, 512  ;;  %p1148_p7 = scmp.lt.s32.totalorder %s74_s14, %s74_s14 }
  0x32   :  { %p1144_p6 = scmp.ne.s32.totalorder %s74_s14, %s1143_s15  ;;  %p1149_p8 = scmp.lt.s32.totalorder %s1143_s15, %s1143_s15 }
  0x34   :  { %p1150_p9 = por %p1149_p8, %p1148_p7 }
  0x36   :  { %p1151_p10 = pnand %p1150_p9, %p1144_p6 }
  0x38   :  { %1154 = shalt.err (!%p1151_p10)
}
  0x39   :  { %79 = dma.hbm_to_vmem [thread:$0]  %s2016_s7, 512, %s74_s14, [#allocation14], %s1592_s19, %s1592_s19, %s1593_s20  }
  0x3a   :  { %1547 = dma.done.wait [#allocation8], 32  }
  0x3b   :  { %1548 = vsyncadd [#allocation8], 4294967264 }
  0x3c   :  { %1549 = dma.done.wait [#allocation6], 128  }
  0x3d   :  { %1550 = vsyncadd [#allocation6], 4294967168 }
  0x3e   :  { %1551 = dma.done.wait [#allocation11], 1536  }
  0x3f   :  { %1552 = vsyncadd [#allocation11], 4294965760 }
  0x40   :  { %1553 = dma.done.wait [#allocation14], 512  }
  0x41   :  { %1554 = vsyncadd [#allocation14], 4294966784 }
  0x42   :  { %97 = sfence }
  0x43   :  { %s98_s5 = sld [smem:[#allocation5]]  ;;  %v1700_v0 = vld [vmem:[#allocation9] sm:$0xff]  ;;  %s1598_s17 = smov [#allocation2]  }
  0x44   :  { %s109_s18 = sshll.u32 %s1598_s17, 4  ;;  %s1702_s21 = sld [smem:[#allocation5 + $0x80]]  ;;  %s1704_s18 = int_to_ptr.vmem [resolvable:$true] %s109_s18 }
  0x45   :  { %s1599_s7 = smov [#allocation3]   ;;  %s1706_s20 = sld [smem:[#allocation5 + $0x1]] }
  0x46   :  { %s123_s19 = sshll.u32 %s1599_s7, 4  ;;  %s1600_s22 = smov [#allocation2 + $0x1]   ;;  %s1708_s19 = int_to_ptr.vmem [resolvable:$true] %s123_s19 }
  0x47   :  { %s140_s23 = sshll.u32 %s1600_s22, 4  ;;  %s1710_s0 = sld [smem:[#allocation5 + $0x81]]  ;;  %s1712_s23 = int_to_ptr.vmem [resolvable:$true] %s140_s23 }
  0x48   :  { %s1721_s11 = scalar_lea.hbm %s2010_s1, 896 }
  0x49   :  { %s900_s24 = sshll.u32 %s98_s5, 4 }
  0x4a   :  { %s101_s27 = scalar_lea.hbm %s2010_s1, %s900_s24  ;;  %s901_s28 = sshll.u32 %s1702_s21, 4 }
  0x4b   :  { %s1155_s4 = scalar_lea.hbm %s101_s27, 16  ;;  %p1158_p12 = scmp.lt.s32.totalorder %s101_s27, %s2010_s1 }
  0x4c   :  { %p1156_p11 = scmp.ne.s32.totalorder %s101_s27, %s1155_s4  ;;  %p1159_p13 = scmp.lt.s32.totalorder %s1721_s11, %s1155_s4 }
  0x4e   :  { %p1160_p0 = por %p1159_p13, %p1158_p12 }
  0x50   :  { %p1161_p1 = pnand %p1160_p0, %p1156_p11 }
  0x52   :  { %1164 = shalt.err (!%p1161_p1)  }
  0x53   :  { %s1165_s14 = scalar_lea.vmem %s1704_s18, 16  ;;  %s1730_s15 = scalar_lea.vmem %s1704_s18, 128 }
  0x54   :  { %p1166_p2 = scmp.ne.s32.totalorder %s1704_s18, %s1165_s14  ;;  %p1170_p3 = scmp.lt.s32.totalorder %s1704_s18, %s1704_s18 }
  0x55   :  { %p1171_p4 = scmp.lt.s32.totalorder %s1730_s15, %s1165_s14 }
  0x57   :  { %p1172_p5 = por %p1171_p4, %p1170_p3 }
  0x59   :  { %p1173_p6 = pnand %p1172_p5, %p1166_p2 }
  0x5b   :  { %1176 = shalt.err (!%p1173_p6)  }
  0x5c   :  { %112 = dma.hbm_to_vmem [thread:$0]  %s101_s27, 16, %s1704_s18, [#allocation4] }
  0x5d   :  { %s114_s5 = scalar_lea.hbm %s2011_s2, %s901_s28  ;;  %s904_s17 = sshll.u32 %s1706_s20, 4 }
  0x5e   :  { %s1177_s21 = scalar_lea.hbm %s114_s5, 16  ;;  %s1743_s24 = scalar_lea.hbm %s2011_s2, 896 }
  0x5f   :  { %p1178_p7 = scmp.ne.s32.totalorder %s114_s5, %s1177_s21  ;;  %p1180_p8 = scmp.lt.s32.totalorder %s114_s5, %s2011_s2 }
  0x60   :  { %p1181_p9 = scmp.lt.s32.totalorder %s1743_s24, %s1177_s21 }
  0x62   :  { %p1182_p10 = por %p1181_p9, %p1180_p8 }
  0x64   :  { %p1183_p11 = pnand %p1182_p10, %p1178_p7 }
  0x66   :  { %1186 = shalt.err (!%p1183_p11)  }
  0x67   :  { %s1187_s20 = scalar_lea.vmem %s1708_s19, 16  ;;  %s1752_s27 = scalar_lea.vmem %s1708_s19, 128 }
  0x68   :  { %p1188_p12 = scmp.ne.s32.totalorder %s1708_s19, %s1187_s20  ;;  %p1192_p13 = scmp.lt.s32.totalorder %s1708_s19, %s1708_s19 }
  0x69   :  { %p1193_p0 = scmp.lt.s32.totalorder %s1752_s27, %s1187_s20 }
  0x6b   :  { %p1194_p1 = por %p1193_p0, %p1192_p13 }
  0x6d   :  { %p1195_p2 = pnand %p1194_p1, %p1188_p12 }
  0x6f   :  { %1198 = shalt.err (!%p1195_p2)  }
  0x70   :  { %126 = dma.hbm_to_vmem [thread:$0]  %s114_s5, 16, %s1708_s19, [#allocation4 + $0x8] }
  0x71   :  { %s130_s29 = scalar_lea.hbm %s2010_s1, %s904_s17  ;;  %s905_s30 = sshll.u32 %s1710_s0, 4 }
  0x72   :  { %s1199_s12 = scalar_lea.hbm %s130_s29, 16  ;;  %p1202_p4 = scmp.lt.s32.totalorder %s130_s29, %s2010_s1 }
  0x73   :  { %p1200_p3 = scmp.ne.s32.totalorder %s130_s29, %s1199_s12  ;;  %p1203_p5 = scmp.lt.s32.totalorder %s1721_s11, %s1199_s12 }
  0x75   :  { %p1204_p6 = por %p1203_p5, %p1202_p4 }
  0x77   :  { %p1205_p7 = pnand %p1204_p6, %p1200_p3 }
  0x79   :  { %1208 = shalt.err (!%p1205_p7)  }
  0x7a   :  { %s1209_s3 = scalar_lea.vmem %s1712_s23, 16  ;;  %p1214_p9 = scmp.lt.s32.totalorder %s1712_s23, %s1704_s18 }
  0x7b   :  { %p1210_p8 = scmp.ne.s32.totalorder %s1712_s23, %s1209_s3  ;;  %p1215_p10 = scmp.lt.s32.totalorder %s1730_s15, %s1209_s3 }
  0x7d   :  { %p1216_p11 = por %p1215_p10, %p1214_p9 }
  0x7f   :  { %p1217_p12 = pnand %p1216_p11, %p1210_p8 }
  0x81   :  { %1220 = shalt.err (!%p1217_p12)  }
  0x82   :  { %143 = dma.hbm_to_vmem [thread:$0]  %s130_s29, 16, %s1712_s23, [#allocation4 + $0x1] }
  0x83   :  { %s145_s5 = scalar_lea.hbm %s2011_s2, %s905_s30  ;;  %s1601_s17 = smov [#allocation3 + $0x1]  }
  0x84   :  { %s155_s21 = sshll.u32 %s1601_s17, 4  ;;  %s906_s7 = sld [smem:[#allocation5 + $0x2]]  ;;  %s156_s21 = int_to_ptr.vmem [resolvable:$true] %s155_s21 }
  0x85   :  { %s1221_s22 = scalar_lea.hbm %s145_s5, 16  ;;  %p1224_p0 = scmp.lt.s32.totalorder %s145_s5, %s2011_s2 }
  0x86   :  { %p1222_p13 = scmp.ne.s32.totalorder %s145_s5, %s1221_s22  ;;  %p1225_p1 = scmp.lt.s32.totalorder %s1743_s24, %s1221_s22 }
  0x88   :  { %p1226_p2 = por %p1225_p1, %p1224_p0 }
  0x8a   :  { %p1227_p3 = pnand %p1226_p2, %p1222_p13 }
  0x8c   :  { %1230 = shalt.err (!%p1227_p3)  }
  0x8d   :  { %s1231_s20 = scalar_lea.vmem %s156_s21, 16  ;;  %p1236_p5 = scmp.lt.s32.totalorder %s156_s21, %s1708_s19 }
  0x8e   :  { %p1232_p4 = scmp.ne.s32.totalorder %s156_s21, %s1231_s20  ;;  %p1237_p6 = scmp.lt.s32.totalorder %s1752_s27, %s1231_s20 }
  0x90   :  { %p1238_p7 = por %p1237_p6, %p1236_p5 }
  0x92   :  { %p1239_p8 = pnand %p1238_p7, %p1232_p4 }
  0x94   :  { %1242 = shalt.err (!%p1239_p8)  }
  0x95   :  { %158 = dma.hbm_to_vmem [thread:$0]  %s145_s5, 16, %s156_s21, [#allocation4 + $0x9] }
  0x96   :  { %s1602_s23 = smov [#allocation2 + $0x2]   ;;  %s907_s4 = sld [smem:[#allocation5 + $0x82]] }
  0x97   :  { %s172_s28 = sshll.u32 %s1602_s23, 4  ;;  %s1603_s29 = smov [#allocation3 + $0x2]   ;;  %s173_s28 = int_to_ptr.vmem [resolvable:$true] %s172_s28 }
  0x98   :  { %s187_s30 = sshll.u32 %s1603_s29, 4  ;;  %s1781_s12 = sld [smem:[#allocation5 + $0x3]]  ;;  %s1783_s30 = int_to_ptr.vmem [resolvable:$true] %s187_s30 }
  0x99   :  { %s908_s13 = sshll.u32 %s906_s7, 4 }
  0x9a   :  { %s162_s0 = scalar_lea.hbm %s2010_s1, %s908_s13 }
  0x9b   :  { %s1243_s16 = scalar_lea.hbm %s162_s0, 16  ;;  %p1246_p10 = scmp.lt.s32.totalorder %s162_s0, %s2010_s1 }
  0x9c   :  { %p1244_p9 = scmp.ne.s32.totalorder %s162_s0, %s1243_s16  ;;  %p1247_p11 = scmp.lt.s32.totalorder %s1721_s11, %s1243_s16 }
  0x9e   :  { %p1248_p12 = por %p1247_p11, %p1246_p10 }
  0xa0   :  { %p1249_p13 = pnand %p1248_p12, %p1244_p9 }
  0xa2   :  { %1252 = shalt.err (!%p1249_p13)  }
  0xa3   :  { %s1253_s21 = scalar_lea.vmem %s173_s28, 16  ;;  %p1258_p1 = scmp.lt.s32.totalorder %s173_s28, %s1704_s18 }
  0xa4   :  { %p1254_p0 = scmp.ne.s32.totalorder %s173_s28, %s1253_s21  ;;  %p1259_p2 = scmp.lt.s32.totalorder %s1730_s15, %s1253_s21 }
  0xa6   :  { %p1260_p3 = por %p1259_p2, %p1258_p1 }
  0xa8   :  { %p1261_p4 = pnand %p1260_p3, %p1254_p0 }
  0xaa   :  { %1264 = shalt.err (!%p1261_p4)  }
  0xab   :  { %175 = dma.hbm_to_vmem [thread:$0]  %s162_s0, 16, %s173_s28, [#allocation4 + $0x2] }
  0xac   :  { %s909_s7 = sshll.u32 %s907_s4, 4  ;;  %s1604_s22 = smov [#allocation2 + $0x3]  }
  0xad   :  { %s204_s25 = sshll.u32 %s1604_s22, 4  ;;  %s177_s23 = scalar_lea.hbm %s2011_s2, %s909_s7  ;;  %s1797_s25 = int_to_ptr.vmem [resolvable:$true] %s204_s25 }
  0xae   :  { %s1265_s29 = scalar_lea.hbm %s177_s23, 16  ;;  %p1268_p6 = scmp.lt.s32.totalorder %s177_s23, %s2011_s2 }
  0xaf   :  { %p1266_p5 = scmp.ne.s32.totalorder %s177_s23, %s1265_s29  ;;  %p1269_p7 = scmp.lt.s32.totalorder %s1743_s24, %s1265_s29 }
  0xb1   :  { %p1270_p8 = por %p1269_p7, %p1268_p6 }
  0xb3   :  { %p1271_p9 = pnand %p1270_p8, %p1266_p5 }
  0xb5   :  { %1274 = shalt.err (!%p1271_p9)  }
  0xb6   :  { %s1275_s28 = scalar_lea.vmem %s1783_s30, 16  ;;  %p1280_p11 = scmp.lt.s32.totalorder %s1783_s30, %s1708_s19 }
  0xb7   :  { %p1276_p10 = scmp.ne.s32.totalorder %s1783_s30, %s1275_s28  ;;  %p1281_p12 = scmp.lt.s32.totalorder %s1752_s27, %s1275_s28 }
  0xb9   :  { %p1282_p13 = por %p1281_p12, %p1280_p11 }
  0xbb   :  { %p1283_p0 = pnand %p1282_p13, %p1276_p10 }
  0xbd   :  { %1286 = shalt.err (!%p1283_p0)  }
  0xbe   :  { %190 = dma.hbm_to_vmem [thread:$0]  %s177_s23, 16, %s1783_s30, [#allocation4 + $0xa] }
  0xbf   :  { %s912_s4 = sshll.u32 %s1781_s12, 4  ;;  %s911_s3 = sld [smem:[#allocation5 + $0x83]] }
  0xc0   :  { %s194_s17 = scalar_lea.hbm %s2010_s1, %s912_s4 }
  0xc1   :  { %s1287_s5 = scalar_lea.hbm %s194_s17, 16  ;;  %p1290_p2 = scmp.lt.s32.totalorder %s194_s17, %s2010_s1 }
  0xc2   :  { %p1288_p1 = scmp.ne.s32.totalorder %s194_s17, %s1287_s5  ;;  %p1291_p3 = scmp.lt.s32.totalorder %s1721_s11, %s1287_s5 }
  0xc4   :  { %p1292_p4 = por %p1291_p3, %p1290_p2 }
  0xc6   :  { %p1293_p5 = pnand %p1292_p4, %p1288_p1 }
  0xc8   :  { %1296 = shalt.err (!%p1293_p5)  }
  0xc9   :  { %s1297_s30 = scalar_lea.vmem %s1797_s25, 16  ;;  %p1302_p7 = scmp.lt.s32.totalorder %s1797_s25, %s1704_s18 }
  0xca   :  { %p1298_p6 = scmp.ne.s32.totalorder %s1797_s25, %s1297_s30  ;;  %p1303_p8 = scmp.lt.s32.totalorder %s1730_s15, %s1297_s30 }
  0xcc   :  { %p1304_p9 = por %p1303_p8, %p1302_p7 }
  0xce   :  { %p1305_p10 = pnand %p1304_p9, %p1298_p6 }
  0xd0   :  { %1308 = shalt.err (!%p1305_p10)  }
  0xd1   :  { %207 = dma.hbm_to_vmem [thread:$0]  %s194_s17, 16, %s1797_s25, [#allocation4 + $0x3] }
  0xd2   :  { %s1605_s12 = smov [#allocation3 + $0x3]   ;;  %s914_s26 = sld [smem:[#allocation5 + $0x4]] }
  0xd3   :  { %s219_s22 = sshll.u32 %s1605_s12, 4  ;;  %s1606_s20 = smov [#allocation2 + $0x4]   ;;  %s220_s22 = int_to_ptr.vmem [resolvable:$true] %s219_s22 }
  0xd4   :  { %s236_s23 = sshll.u32 %s1606_s20, 4  ;;  %s1823_s29 = sld [smem:[#allocation5 + $0x84]]  ;;  %s1825_s23 = int_to_ptr.vmem [resolvable:$true] %s236_s23 }
  0xd5   :  { %s913_s13 = sshll.u32 %s911_s3, 4 }
  0xd6   :  { %s209_s4 = scalar_lea.hbm %s2011_s2, %s913_s13 }
  0xd7   :  { %s1309_s0 = scalar_lea.hbm %s209_s4, 16  ;;  %p1312_p12 = scmp.lt.s32.totalorder %s209_s4, %s2011_s2 }
  0xd8   :  { %p1310_p11 = scmp.ne.s32.totalorder %s209_s4, %s1309_s0  ;;  %p1313_p13 = scmp.lt.s32.totalorder %s1743_s24, %s1309_s0 }
  0xda   :  { %p1314_p0 = por %p1313_p13, %p1312_p12 }
  0xdc   :  { %p1315_p1 = pnand %p1314_p0, %p1310_p11 }
  0xde   :  { %1318 = shalt.err (!%p1315_p1)  }
  0xdf   :  { %s1319_s25 = scalar_lea.vmem %s220_s22, 16  ;;  %p1324_p3 = scmp.lt.s32.totalorder %s220_s22, %s1708_s19 }
  0xe0   :  { %p1320_p2 = scmp.ne.s32.totalorder %s220_s22, %s1319_s25  ;;  %p1325_p4 = scmp.lt.s32.totalorder %s1752_s27, %s1319_s25 }
  0xe2   :  { %p1326_p5 = por %p1325_p4, %p1324_p3 }
  0xe4   :  { %p1327_p6 = pnand %p1326_p5, %p1320_p2 }
  0xe6   :  { %1330 = shalt.err (!%p1327_p6)  }
  0xe7   :  { %222 = dma.hbm_to_vmem [thread:$0]  %s209_s4, 16, %s220_s22, [#allocation4 + $0xb] }
  0xe8   :  { %s916_s3 = sshll.u32 %s914_s26, 4  ;;  %s1607_s17 = smov [#allocation3 + $0x4]  }
  0xe9   :  { %s251_s21 = sshll.u32 %s1607_s17, 4  ;;  %s226_s12 = scalar_lea.hbm %s2010_s1, %s916_s3  ;;  %s1839_s21 = int_to_ptr.vmem [resolvable:$true] %s251_s21 }
  0xea   :  { %s1331_s20 = scalar_lea.hbm %s226_s12, 16  ;;  %p1334_p8 = scmp.lt.s32.totalorder %s226_s12, %s2010_s1 }
  0xeb   :  { %p1332_p7 = scmp.ne.s32.totalorder %s226_s12, %s1331_s20  ;;  %p1335_p9 = scmp.lt.s32.totalorder %s1721_s11, %s1331_s20 }
  0xed   :  { %p1336_p10 = por %p1335_p9, %p1334_p8 }
  0xef   :  { %p1337_p11 = pnand %p1336_p10, %p1332_p7 }
  0xf1   :  { %1340 = shalt.err (!%p1337_p11)  }
  0xf2   :  { %s1341_s22 = scalar_lea.vmem %s1825_s23, 16  ;;  %p1346_p13 = scmp.lt.s32.totalorder %s1825_s23, %s1704_s18 }
  0xf3   :  { %p1342_p12 = scmp.ne.s32.totalorder %s1825_s23, %s1341_s22  ;;  %p1347_p0 = scmp.lt.s32.totalorder %s1730_s15, %s1341_s22 }
  0xf5   :  { %p1348_p1 = por %p1347_p0, %p1346_p13 }
  0xf7   :  { %p1349_p2 = pnand %p1348_p1, %p1342_p12 }
  0xf9   :  { %1352 = shalt.err (!%p1349_p2)  }
  0xfa   :  { %239 = dma.hbm_to_vmem [thread:$0]  %s226_s12, 16, %s1825_s23, [#allocation4 + $0x4] }
  0xfb   :  { %s917_s26 = sshll.u32 %s1823_s29, 4  ;;  %s918_s28 = sld [smem:[#allocation5 + $0x5]] }
  0xfc   :  { %s241_s16 = scalar_lea.hbm %s2011_s2, %s917_s26 }
  0xfd   :  { %s1353_s5 = scalar_lea.hbm %s241_s16, 16  ;;  %p1356_p4 = scmp.lt.s32.totalorder %s241_s16, %s2011_s2 }
  0xfe   :  { %p1354_p3 = scmp.ne.s32.totalorder %s241_s16, %s1353_s5  ;;  %p1357_p5 = scmp.lt.s32.totalorder %s1743_s24, %s1353_s5 }
 0x100   :  { %p1358_p6 = por %p1357_p5, %p1356_p4 }
 0x102   :  { %p1359_p7 = pnand %p1358_p6, %p1354_p3 }
 0x104   :  { %1362 = shalt.err (!%p1359_p7)  }
 0x105   :  { %s1363_s23 = scalar_lea.vmem %s1839_s21, 16  ;;  %p1368_p9 = scmp.lt.s32.totalorder %s1839_s21, %s1708_s19 }
 0x106   :  { %p1364_p8 = scmp.ne.s32.totalorder %s1839_s21, %s1363_s23  ;;  %p1369_p10 = scmp.lt.s32.totalorder %s1752_s27, %s1363_s23 }
 0x108   :  { %p1370_p11 = por %p1369_p10, %p1368_p9 }
 0x10a   :  { %p1371_p12 = pnand %p1370_p11, %p1364_p8 }
 0x10c   :  { %1374 = shalt.err (!%p1371_p12)  }
 0x10d   :  { %254 = dma.hbm_to_vmem [thread:$0]  %s241_s16, 16, %s1839_s21, [#allocation4 + $0xc] }
 0x10e   :  { %s1608_s29 = smov [#allocation2 + $0x5]   ;;  %s919_s7 = sld [smem:[#allocation5 + $0x85]] }
 0x10f   :  { %s268_s17 = sshll.u32 %s1608_s29, 4  ;;  %s1609_s30 = smov [#allocation3 + $0x5]   ;;  %s269_s17 = int_to_ptr.vmem [resolvable:$true] %s268_s17 }
 0x110   :  { %s283_s12 = sshll.u32 %s1609_s30, 4  ;;  %s1865_s20 = sld [smem:[#allocation5 + $0x6]]  ;;  %s1867_s12 = int_to_ptr.vmem [resolvable:$true] %s283_s12 }
 0x111   :  { %s920_s13 = sshll.u32 %s918_s28, 4 }
 0x112   :  { %s258_s26 = scalar_lea.hbm %s2010_s1, %s920_s13 }
 0x113   :  { %s1375_s4 = scalar_lea.hbm %s258_s26, 16  ;;  %p1378_p0 = scmp.lt.s32.totalorder %s258_s26, %s2010_s1 }
 0x114   :  { %p1376_p13 = scmp.ne.s32.totalorder %s258_s26, %s1375_s4  ;;  %p1379_p1 = scmp.lt.s32.totalorder %s1721_s11, %s1375_s4 }
 0x116   :  { %p1380_p2 = por %p1379_p1, %p1378_p0 }
 0x118   :  { %p1381_p3 = pnand %p1380_p2, %p1376_p13 }
 0x11a   :  { %1384 = shalt.err (!%p1381_p3)  }
 0x11b   :  { %s1385_s21 = scalar_lea.vmem %s269_s17, 16  ;;  %p1390_p5 = scmp.lt.s32.totalorder %s269_s17, %s1704_s18 }
 0x11c   :  { %p1386_p4 = scmp.ne.s32.totalorder %s269_s17, %s1385_s21  ;;  %p1391_p6 = scmp.lt.s32.totalorder %s1730_s15, %s1385_s21 }
 0x11e   :  { %p1392_p7 = por %p1391_p6, %p1390_p5 }
 0x120   :  { %p1393_p8 = pnand %p1392_p7, %p1386_p4 }
 0x122   :  { %1396 = shalt.err (!%p1393_p8)  }
 0x123   :  { %271 = dma.hbm_to_vmem [thread:$0]  %s258_s26, 16, %s269_s17, [#allocation4 + $0x5] }
 0x124   :  { %s921_s28 = sshll.u32 %s919_s7, 4  ;;  %s1610_s16 = smov [#allocation2 + $0x6]  }
 0x125   :  { %s300_s25 = sshll.u32 %s1610_s16, 4  ;;  %s273_s29 = scalar_lea.hbm %s2011_s2, %s921_s28  ;;  %s1881_s25 = int_to_ptr.vmem [resolvable:$true] %s300_s25 }
 0x126   :  { %s1397_s30 = scalar_lea.hbm %s273_s29, 16  ;;  %p1400_p10 = scmp.lt.s32.totalorder %s273_s29, %s2011_s2 }
 0x127   :  { %p1398_p9 = scmp.ne.s32.totalorder %s273_s29, %s1397_s30  ;;  %p1401_p11 = scmp.lt.s32.totalorder %s1743_s24, %s1397_s30 }
 0x129   :  { %p1402_p12 = por %p1401_p11, %p1400_p10 }
 0x12b   :  { %p1403_p13 = pnand %p1402_p12, %p1398_p9 }
 0x12d   :  { %1406 = shalt.err (!%p1403_p13)  }
 0x12e   :  { %s1407_s17 = scalar_lea.vmem %s1867_s12, 16  ;;  %p1412_p1 = scmp.lt.s32.totalorder %s1867_s12, %s1708_s19 }
 0x12f   :  { %p1408_p0 = scmp.ne.s32.totalorder %s1867_s12, %s1407_s17  ;;  %p1413_p2 = scmp.lt.s32.totalorder %s1752_s27, %s1407_s17 }
 0x131   :  { %p1414_p3 = por %p1413_p2, %p1412_p1 }
 0x133   :  { %p1415_p4 = pnand %p1414_p3, %p1408_p0 }
 0x135   :  { %1418 = shalt.err (!%p1415_p4)  }
 0x136   :  { %286 = dma.hbm_to_vmem [thread:$0]  %s273_s29, 16, %s1867_s12, [#allocation4 + $0xd] }
 0x137   :  { %s924_s7 = sshll.u32 %s1865_s20, 4  ;;  %s923_s22 = sld [smem:[#allocation5 + $0x86]] }
 0x138   :  { %s290_s0 = scalar_lea.hbm %s2010_s1, %s924_s7 }
 0x139   :  { %s1419_s5 = scalar_lea.hbm %s290_s0, 16  ;;  %p1422_p6 = scmp.lt.s32.totalorder %s290_s0, %s2010_s1 }
 0x13a   :  { %p1420_p5 = scmp.ne.s32.totalorder %s290_s0, %s1419_s5  ;;  %p1423_p7 = scmp.lt.s32.totalorder %s1721_s11, %s1419_s5 }
 0x13c   :  { %p1424_p8 = por %p1423_p7, %p1422_p6 }
 0x13e   :  { %p1425_p9 = pnand %p1424_p8, %p1420_p5 }
 0x140   :  { %1428 = shalt.err (!%p1425_p9)  }
 0x141   :  { %s1429_s12 = scalar_lea.vmem %s1881_s25, 16  ;;  %p1434_p11 = scmp.lt.s32.totalorder %s1881_s25, %s1704_s18 }
 0x142   :  { %p1430_p10 = scmp.ne.s32.totalorder %s1881_s25, %s1429_s12  ;;  %p1435_p12 = scmp.lt.s32.totalorder %s1730_s15, %s1429_s12 }
 0x144   :  { %p1436_p13 = por %p1435_p12, %p1434_p11 }
 0x146   :  { %p1437_p0 = pnand %p1436_p13, %p1430_p10 }
 0x148   :  { %1440 = shalt.err (!%p1437_p0)  }
 0x149   :  { %303 = dma.hbm_to_vmem [thread:$0]  %s290_s0, 16, %s1881_s25, [#allocation4 + $0x6] }
 0x14a   :  { %s1611_s20 = smov [#allocation3 + $0x6]   ;;  %s926_s3 = sld [smem:[#allocation5 + $0x7]] }
 0x14b   :  { %s315_s16 = sshll.u32 %s1611_s20, 4  ;;  %s1612_s23 = smov [#allocation2 + $0x7]   ;;  %s316_s16 = int_to_ptr.vmem [resolvable:$true] %s315_s16 }
 0x14c   :  { %s332_s29 = sshll.u32 %s1612_s23, 4  ;;  %s1907_s30 = sld [smem:[#allocation5 + $0x87]]  ;;  %s1909_s29 = int_to_ptr.vmem [resolvable:$true] %s332_s29 }
 0x14d   :  { %s925_s13 = sshll.u32 %s923_s22, 4 }
 0x14e   :  { %s305_s7 = scalar_lea.hbm %s2011_s2, %s925_s13 }
 0x14f   :  { %s1441_s26 = scalar_lea.hbm %s305_s7, 16  ;;  %p1444_p2 = scmp.lt.s32.totalorder %s305_s7, %s2011_s2 }
 0x150   :  { %p1442_p1 = scmp.ne.s32.totalorder %s305_s7, %s1441_s26  ;;  %p1445_p3 = scmp.lt.s32.totalorder %s1743_s24, %s1441_s26 }
 0x152   :  { %p1446_p4 = por %p1445_p3, %p1444_p2 }
 0x154   :  { %p1447_p5 = pnand %p1446_p4, %p1442_p1 }
 0x156   :  { %1450 = shalt.err (!%p1447_p5)  }
 0x157   :  { %s1451_s25 = scalar_lea.vmem %s316_s16, 16  ;;  %p1456_p7 = scmp.lt.s32.totalorder %s316_s16, %s1708_s19 }
 0x158   :  { %p1452_p6 = scmp.ne.s32.totalorder %s316_s16, %s1451_s25  ;;  %p1457_p8 = scmp.lt.s32.totalorder %s1752_s27, %s1451_s25 }
 0x15a   :  { %p1458_p9 = por %p1457_p8, %p1456_p7 }
 0x15c   :  { %p1459_p10 = pnand %p1458_p9, %p1452_p6 }
 0x15e   :  { %1462 = shalt.err (!%p1459_p10)  }
 0x15f   :  { %318 = dma.hbm_to_vmem [thread:$0]  %s305_s7, 16, %s316_s16, [#allocation4 + $0xe] }
 0x160   :  { %s928_s22 = sshll.u32 %s926_s3, 4  ;;  %s1613_s0 = smov [#allocation3 + $0x7]  }
 0x161   :  { %s347_s21 = sshll.u32 %s1613_s0, 4  ;;  %s322_s20 = scalar_lea.hbm %s2010_s1, %s928_s22  ;;  %s1923_s21 = int_to_ptr.vmem [resolvable:$true] %s347_s21 }
 0x162   :  { %s1463_s23 = scalar_lea.hbm %s322_s20, 16  ;;  %p1466_p12 = scmp.lt.s32.totalorder %s322_s20, %s2010_s1 }
 0x163   :  { %p1464_p11 = scmp.ne.s32.totalorder %s322_s20, %s1463_s23  ;;  %p1467_p13 = scmp.lt.s32.totalorder %s1721_s11, %s1463_s23 }
 0x165   :  { %p1468_p0 = por %p1467_p13, %p1466_p12 }
 0x167   :  { %p1469_p1 = pnand %p1468_p0, %p1464_p11 }
 0x169   :  { %1472 = shalt.err (!%p1469_p1)  }
 0x16a   :  { %s1473_s16 = scalar_lea.vmem %s1909_s29, 16  ;;  %p1478_p3 = scmp.lt.s32.totalorder %s1909_s29, %s1704_s18 }
 0x16b   :  { %p1474_p2 = scmp.ne.s32.totalorder %s1909_s29, %s1473_s16  ;;  %p1479_p4 = scmp.lt.s32.totalorder %s1730_s15, %s1473_s16 }
 0x16d   :  { %p1480_p5 = por %p1479_p4, %p1478_p3 }
 0x16f   :  { %p1481_p6 = pnand %p1480_p5, %p1474_p2 }
 0x171   :  { %1484 = shalt.err (!%p1481_p6)  }
 0x172   :  { %335 = dma.hbm_to_vmem [thread:$0]  %s322_s20, 16, %s1909_s29, [#allocation4 + $0x7] }
 0x173   :  { %s929_s1 = sshll.u32 %s1907_s30, 4 }
 0x174   :  { %s337_s17 = scalar_lea.hbm %s2011_s2, %s929_s1 }
 0x175   :  { %s1485_s7 = scalar_lea.hbm %s337_s17, 16  ;;  %p1488_p8 = scmp.lt.s32.totalorder %s337_s17, %s2011_s2 }
 0x176   :  { %p1486_p7 = scmp.ne.s32.totalorder %s337_s17, %s1485_s7  ;;  %p1489_p9 = scmp.lt.s32.totalorder %s1743_s24, %s1485_s7 }
 0x178   :  { %p1490_p10 = por %p1489_p9, %p1488_p8 }
 0x17a   :  { %p1491_p11 = pnand %p1490_p10, %p1486_p7 }
 0x17c   :  { %1494 = shalt.err (!%p1491_p11)  }
 0x17d   :  { %s1495_s18 = scalar_lea.vmem %s1923_s21, 16  ;;  %p1500_p13 = scmp.lt.s32.totalorder %s1923_s21, %s1708_s19 }
 0x17e   :  { %p1496_p12 = scmp.ne.s32.totalorder %s1923_s21, %s1495_s18  ;;  %p1501_p0 = scmp.lt.s32.totalorder %s1752_s27, %s1495_s18 }
 0x180   :  { %p1502_p1 = por %p1501_p0, %p1500_p13 }
 0x182   :  { %p1503_p2 = pnand %p1502_p1, %p1496_p12 }
 0x184   :  { %1506 = shalt.err (!%p1503_p2)  }
 0x185   :  { %350 = dma.hbm_to_vmem [thread:$0]  %s337_s17, 16, %s1923_s21, [#allocation4 + $0xf] }
 0x186   :  { %1555 = dma.done.wait [#allocation4], 16 }
 0x187   :  { %1556 = vsyncadd [#allocation4], 4294967280 }
 0x188   :  { %1557 = dma.done.wait [#allocation4 + $0x8], 16 }
 0x189   :  { %1558 = vsyncadd [#allocation4 + $0x8], 4294967280 }
 0x18a   :  { %1559 = dma.done.wait [#allocation4 + $0x1], 16 }
 0x18b   :  { %1560 = vsyncadd [#allocation4 + $0x1], 4294967280 }
 0x18c   :  { %1561 = dma.done.wait [#allocation4 + $0x9], 16 }
 0x18d   :  { %1562 = vsyncadd [#allocation4 + $0x9], 4294967280 }
 0x18e   :  { %1563 = dma.done.wait [#allocation4 + $0x2], 16 }
 0x18f   :  { %1564 = vsyncadd [#allocation4 + $0x2], 4294967280 }
 0x190   :  { %1565 = dma.done.wait [#allocation4 + $0xa], 16 }
 0x191   :  { %1566 = vsyncadd [#allocation4 + $0xa], 4294967280 }
 0x192   :  { %1567 = dma.done.wait [#allocation4 + $0x3], 16 }
 0x193   :  { %1568 = vsyncadd [#allocation4 + $0x3], 4294967280 }
 0x194   :  { %1569 = dma.done.wait [#allocation4 + $0xb], 16 }
 0x195   :  { %1570 = vsyncadd [#allocation4 + $0xb], 4294967280 }
 0x196   :  { %1571 = dma.done.wait [#allocation4 + $0x4], 16 }
 0x197   :  { %1572 = vsyncadd [#allocation4 + $0x4], 4294967280 }
 0x198   :  { %1573 = dma.done.wait [#allocation4 + $0xc], 16 }
 0x199   :  { %1574 = vsyncadd [#allocation4 + $0xc], 4294967280 }
 0x19a   :  { %1575 = dma.done.wait [#allocation4 + $0x5], 16 }
 0x19b   :  { %1576 = vsyncadd [#allocation4 + $0x5], 4294967280 }
 0x19c   :  { %1577 = dma.done.wait [#allocation4 + $0xd], 16 }
 0x19d   :  { %1578 = vsyncadd [#allocation4 + $0xd], 4294967280 }
 0x19e   :  { %1579 = dma.done.wait [#allocation4 + $0x6], 16 }
 0x19f   :  { %1580 = vsyncadd [#allocation4 + $0x6], 4294967280 }
 0x1a0   :  { %1581 = dma.done.wait [#allocation4 + $0xe], 16 }
 0x1a1   :  { %1582 = vsyncadd [#allocation4 + $0xe], 4294967280 }
 0x1a2   :  { %1583 = dma.done.wait [#allocation4 + $0x7], 16 }
 0x1a3   :  { %1584 = vsyncadd [#allocation4 + $0x7], 4294967280 }
 0x1a4   :  { %1585 = dma.done.wait [#allocation4 + $0xf], 16 }
 0x1a5   :  { %1586 = vsyncadd [#allocation4 + $0xf], 4294967280  ;;  %v1614_v1 = vmov 0.0   ;;  %vm1615_vm0 = vmmov 0   ;;  %v391_v2 = vld [vmem:[#allocation10 + $0x18] sm:$0xff]  ;;  %v390_v3 = vld [vmem:[#allocation10 + $0x10] sm:$0xff] }
 0x1a6   :  { %972 = vmatprep.subr.mxu0 %v1614_v1  ;;  %980 = vmatprep.mubr.msk.f32.mxu0 %vm1615_vm0, %v1614_v1  ;;  %v389_v4 = vld [vmem:[#allocation10 + $0x8] sm:$0xff]  ;;  %v388_v5 = vld [vmem:[#allocation10] sm:$0xff]  ;;  %vm392_vm1 = vcmask 261120   ;;  %v386_v7 = vld [vmem:[#allocation3] sm:$0xff]  ;;  %s1616_s2 = smov 64   ;;  %s1617_s19 = smov 32  }
 0x1a7   :  { %983 = vmatprep.subr.mxu1 %v1614_v1  ;;  %999 = vmatprep.mubr.msk.f32.mxu1 %vm1615_vm0, %v1614_v1  ;;  %v385_v6 = vld [vmem:[#allocation2] sm:$0xff]  ;;  %s1618_s15 = smov 96   ;;  %v506_v22 = vld [vmem:[#allocation12 + $0x38] sm:$0xff]  ;;  %v505_v23 = vld [vmem:[#allocation12 + $0x30] sm:$0xff]  ;;  %vm514_vm2 = vcmask 523264   ;;  %s1619_s30 = smov [#allocation16]  }
 0x1a8   :  { %973 = vmatpush3.msra.mxu0 %v391_v2  ;;  %v387_v8 = vadd.f32 %v386_v7, %v385_v6  ;;  %984 = vmatpush3.msra.mxu1 %v506_v22  ;;  %v504_v24 = vld [vmem:[#allocation12 + $0x28] sm:$0xff]  ;;  %v503_v25 = vld [vmem:[#allocation12 + $0x20] sm:$0xff]  ;;  %v502_v26 = vld [vmem:[#allocation12 + $0x18] sm:$0xff]  ;;  %s740_s5 = sshll.u32 %s1619_s30, 4  ;;  %vm625_vm3 = vcmask 785408   ;;  %s741_s5 = int_to_ptr.vmem [resolvable:$true] %s740_s5 }
 0x1a9   :  { %974 = vmatprep.subr.mxu0 %v1614_v1  ;;  %985 = vmatprep.subr.mxu1 %v1614_v1  ;;  %v501_v27 = vld [vmem:[#allocation12 + $0x10] sm:$0xff]  ;;  %v500_v29 = vld [vmem:[#allocation12 + $0x8] sm:$0xff]  ;;  %v499_v30 = vld [vmem:[#allocation12] sm:$0xff]  ;;  %p1512_p4 = scmp.lt.s32.totalorder %s741_s5, %s741_s5 }
 0x1aa   :  { %975 = vmatpush3.msra.mxu0 %v390_v3  ;;  %986 = vmatpush3.msra.mxu1 %v505_v23  ;;  %v932_v36 = vld [vmem:[%s2015_s6] ss:$0 sm:$0xff]  ;;  %v631_v51 = vld [vmem:[#allocation13 + $0x18] sm:$0xff]  ;;  %v630_v52 = vld [vmem:[#allocation13 + $0x10] sm:$0xff] }
 0x1ab   :  { %976 = vmatprep.subr.mxu0 %v1614_v1  ;;  %987 = vmatprep.subr.mxu1 %v1614_v1  ;;  %v629_v53 = vld [vmem:[#allocation13 + $0x8] sm:$0xff]  ;;  %v628_v54 = vld [vmem:[#allocation13] sm:$0xff] }
 0x1ac   :  { %977 = vmatpush3.msra.mxu0 %v389_v4  ;;  %988 = vmatpush3.msra.mxu1 %v504_v24  ;;  %v935_v59 = vld [vmem:[%s2017_s8] ss:$0 sm:$0xff]  ;;  %s1507_s8 = scalar_lea.vmem %s741_s5, 128 }
 0x1ad   :  { %978 = vmatprep.subr.mxu0 %v1614_v1  ;;  %989 = vmatprep.subr.mxu1 %v1614_v1  ;;  %p1508_p3 = scmp.ne.s32.totalorder %s741_s5, %s1507_s8  ;;  %p1513_p5 = scmp.lt.s32.totalorder %s1507_s8, %s1507_s8 }
 0x1ae   :  { %979 = vmatpush3.msra.mxu0 %v388_v5  ;;  %990 = vmatpush3.msra.mxu1 %v503_v25 }
 0x1af   :  { %981 = vmatmul.mubr.msk.f32.vlgmr.msra.gmra.mxu0 %vm392_vm1, %v1700_v0  ;;  %1002 = vmatprep.subr.mxu0 %v1614_v1  ;;  %p1514_p6 = por %p1513_p5, %p1512_p4 }
 0x1b0   :  { %1010 = vmatprep.mubr.msk.f32.mxu0 %vm1615_vm0, %v1614_v1  ;;  %991 = vmatprep.subr.mxu1 %v1614_v1 }
 0x1b1   :  { %992 = vmatpush3.msra.mxu1 %v502_v26  ;;  %1003 = vmatpush3.msra.mxu0 %v631_v51  ;;  %p1515_p7 = pnand %p1514_p6, %p1508_p3 }
 0x1b2   :  { %993 = vmatprep.subr.mxu1 %v1614_v1  ;;  %1004 = vmatprep.subr.mxu0 %v1614_v1 }
 0x1b3   :  { %994 = vmatpush3.msra.mxu1 %v501_v27  ;;  %1005 = vmatpush3.msra.mxu0 %v630_v52 }
 0x1b4   :  { %995 = vmatprep.subr.mxu1 %v1614_v1  ;;  %1006 = vmatprep.subr.mxu0 %v1614_v1 }
 0x1b5   :  { %996 = vmatpush3.msra.mxu1 %v500_v29  ;;  %1007 = vmatpush3.msra.mxu0 %v629_v53 }
 0x1b6   :  { %997 = vmatprep.subr.mxu1 %v1614_v1  ;;  %1008 = vmatprep.subr.mxu0 %v1614_v1 }
 0x1b7   :  { %998 = vmatpush3.msra.mxu1 %v499_v30  ;;  %1009 = vmatpush3.msra.mxu0 %v628_v54 }
 0x26f   :  { %v462_v9 = vpop.f32.mrf.mxu0 }
 0x270   :  { %v466_v10 = vadd.f32 %v462_v9, %v387_v8 }
 0x271   :  { %v982_v11 = vpop.f32.mrf.mxu0 }
 0x272   :  { %1043 = vtanh.f32 %v466_v10  ;;  %v931_v13 = vmul.f32 -1.442695, %v466_v10 }
 0x274   :  { %1045 = vpow2.f32 %v931_v13 }
 0x27f   :  { %v1044_v12 = vpop.eup %1043 }
 0x280   :  { %476 = vrot.lane.b32.xlu0 %v1044_v12, %s1616_s2 }
 0x281   :  { %v1046_v14 = vpop.eup %1045 }
 0x282   :  { %v470_v15 = vadd.f32 1.0, %v1046_v14 }
 0x284   :  { %1047 = vrcp.f32 %v470_v15 }
 0x291   :  { %v1048_v16 = vpop.eup %1047 }
 0x292   :  { %v474_v19 = vmul.f32 %v1048_v16, %v1700_v0 }
 0x2f2   :  { %v477_v17 = vpop.permute.xlu0 %476 }
 0x2f3   :  { %v479_v18 = vmul.f32 %v1048_v16, %v477_v17 }
 0x2f5   :  { %481 = vrot.lane.b32.xlu0 %v479_v18, %s1617_s19 }
 0x2f9   :  { %495 = vrot.lane.b32.xlu0 %v1700_v0, %s1618_s15 }
 0x2fd   :  { %595 = vrot.lane.b32.xlu0 %v1700_v0, %s1616_s2 }
 0x367   :  { %v482_v20 = vpop.permute.xlu0 %481 }
 0x368   :  { %v1966_v21 = vadd.f32 %v482_v20, %v474_v19 }
 0x36a   :  { %1049 = vtanh.f32 %v1966_v21 }
 0x36b   :  { %v496_v33 = vpop.permute.xlu0 %495 }
 0x36f   :  { %v596_v47 = vpop.permute.xlu0 %595 }
 0x377   :  { %v1050_v28 = vpop.eup %1049 }
 0x378   :  { %487 = vrot.lane.b32.xlu1 %v1050_v28, %s1616_s2 }
 0x3ea   :  { %v488_v31 = vpop.permute.xlu1 %487 }
 0x3eb   :  { %v490_v32 = vmul.f32 %v1048_v16, %v488_v31 }
 0x3ed   :  { %492 = vrot.lane.b32.xlu1 %v490_v32, %s1617_s19 }
 0x45f   :  { %v493_v34 = vpop.permute.xlu1 %492 }
 0x460   :  { %v498_v35 = vsel %vm392_vm1, %v493_v34, %v496_v33  ;;  %v623_v5 = vsel %vm392_vm1, %v493_v34, %v1966_v21 }
 0x461   :  { %1000 = vmatmul.mubr.msk.f32.vlgmr.msra.gmra.mxu1 %vm514_vm2, %v498_v35 }
 0x521   :  { %v584_v37 = vpop.f32.mrf.mxu1 }
 0x522   :  { %v585_v38 = vadd.f32 %v932_v36, %v584_v37 }
 0x523   :  { %v1001_v39 = vpop.f32.mrf.mxu1 }
 0x524   :  { %1051 = vtanh.f32 %v585_v38  ;;  %v934_v41 = vmul.f32 -1.442695, %v585_v38 }
 0x526   :  { %1053 = vpow2.f32 %v934_v41 }
 0x531   :  { %v1052_v40 = vpop.eup %1051 }
 0x532   :  { %600 = vrot.lane.b32.xlu1 %v1052_v40, %s1616_s2 }
 0x533   :  { %v1054_v42 = vpop.eup %1053 }
 0x534   :  { %v591_v43 = vadd.f32 1.0, %v1054_v42 }
 0x536   :  { %1055 = vrcp.f32 %v591_v43 }
 0x543   :  { %v1056_v44 = vpop.eup %1055 }
 0x544   :  { %v598_v48 = vmul.f32 %v1056_v44, %v596_v47 }
 0x5a4   :  { %v601_v45 = vpop.permute.xlu1 %600 }
 0x5a5   :  { %v603_v46 = vmul.f32 %v1056_v44, %v601_v45 }
 0x5a7   :  { %605 = vrot.lane.b32.xlu1 %v603_v46, %s1617_s19 }
 0x619   :  { %v606_v49 = vpop.permute.xlu1 %605 }
 0x61a   :  { %v608_v50 = vadd.f32 %v606_v49, %v598_v48 }
 0x61c   :  { %1057 = vtanh.f32 %v608_v50 }
 0x629   :  { %v1058_v55 = vpop.eup %1057 }
 0x62a   :  { %611 = vrot.lane.b32.xlu0 %v1058_v55, %s1616_s2 }
 0x69c   :  { %v612_v56 = vpop.permute.xlu0 %611 }
 0x69d   :  { %v614_v57 = vmul.f32 %v1056_v44, %v612_v56 }
 0x69f   :  { %639 = vrot.lane.b32.xlu1 %v614_v57, %s1617_s19 }
 0x711   :  { %v640_v58 = vpop.permute.xlu1 %639 }
 0x712   :  { %1011 = vmatmul.mubr.msk.f32.vlgmr.msra.gmra.mxu0 %vm392_vm1, %v640_v58 }
 0x7d2   :  { %v709_v60 = vpop.f32.mrf.mxu0 }
 0x7d3   :  { %v710_v61 = vadd.f32 %v935_v59, %v709_v60 }
 0x7d4   :  { %v1012_v62 = vpop.f32.mrf.mxu0 }
 0x7d5   :  { %713 = vmax.xlane.f32.xlu0 %v710_v61 }
 0x7eb   :  { %616 = vrot.lane.b32.xlu0 %v614_v57, %s1618_s15 }
 0x85e   :  { %v714_v63 = vpop.xlane.xlu0 %713 }
 0x85f   :  { %v715_v0 = vsub.f32 %v710_v61, %v714_v63 }
 0x861   :  { %v716_v1 = vmul.f32 1.442695, %v715_v0 }
 0x862   :  { %v617_v4 = vpop.permute.xlu0 %616 }
 0x863   :  { %1059 = vpow2.f32 %v716_v1  ;;  %v624_v6 = vsel %vm514_vm2, %v623_v5, %v617_v4 }
 0x870   :  { %v1060_v2 = vpop.eup %1059 }
 0x871   :  { %718 = vadd.xlane.f32.xlu1 %v1060_v2 }
 0x882   :  { %620 = vrot.lane.b32.xlu1 %v608_v50, %s1616_s2 }
 0x8fa   :  { %v719_v3 = vpop.xlane.xlu1 %718 }
 0x8fb   :  { %1061 = vlog2.f32 %v719_v3 }
 0x8fe   :  { %v621_v7 = vpop.permute.xlu1 %620 }
 0x8ff   :  { %v626_v8 = vsel %vm625_vm3, %v624_v6, %v621_v7 }
 0x900   :  { %627 = vst [vmem:[#allocation16] sm:$0xff] %v626_v8 }
 0x901   :  { %1518 = shalt.err (!%p1515_p7)
}
 0x902   :  { %743 = dma.vmem_to_hbm [thread:$0]  %s741_s5, 128, %s2019_s10, [#allocation17]  }
 0x903   :  { %s1620_s0 = smov [#allocation15]  }
 0x904   :  { %s730_s21 = sshll.u32 %s1620_s0, 4  ;;  %s731_s21 = int_to_ptr.vmem [resolvable:$true] %s730_s21 }
 0x905   :  { %s1527_s28 = scalar_lea.vmem %s731_s21, 128  ;;  %p1532_p9 = scmp.lt.s32.totalorder %s731_s21, %s731_s21 }
 0x906   :  { %p1528_p8 = scmp.ne.s32.totalorder %s731_s21, %s1527_s28  ;;  %p1533_p10 = scmp.lt.s32.totalorder %s1527_s28, %s1527_s28 }
 0x908   :  { %v1062_v9 = vpop.eup %1061  ;;  %p1534_p11 = por %p1533_p10, %p1532_p9 }
 0x909   :  { %v721_v10 = vmul.f32 0.6931472, %v1062_v9 }
 0x90a   :  { %p1535_p12 = pnand %p1534_p11, %p1528_p8 }
 0x90b   :  { %v722_v11 = vsub.f32 %v715_v0, %v721_v10 }
 0x90d   :  { %723 = vst [vmem:[#allocation15] sm:$0xff] %v722_v11 }
 0x90e   :  { %1538 = shalt.err (!%p1535_p12)
}
 0x90f   :  { %733 = dma.vmem_to_hbm [thread:$0]  %s731_s21, 128, %s2018_s9, [#allocation7]  }
 0x910   :  { %1587 = dma.done.wait [#allocation7], 128  }
 0x911   :  { %1588 = vsyncadd [#allocation7], 4294967168 }
 0x912   :  { %1589 = dma.done.wait [#allocation17], 128  }
 0x913   :  { %1590 = vsyncadd [#allocation17], 4294967168 }
 0x914   :  { %750 = vsyncpa [#allocation6], 1 }
 0x915   :  { %751 = vsyncpa [#allocation11], 1 }
 0x916   :  { %752 = vsyncpa [#allocation14], 1 }
 0x917   :  { %753 = vsyncpa [#allocation7], 1 }
 0x918   :  { %754 = vsyncpa [#allocation17], 1 }
 0x919   :  { %755 = vsyncpa [#allocation8], 1 }
 0x91a   :  { %756 = vsyncmov [#allocation4] }
 0x91d   :  { %s757_s10 = vpop.sfrf %756 }
 0x91e   :  { %p937_p13 = scmp.ne.s32.totalorder %s757_s10, 0 }
 0x920   :  { %761 = shalt.err (%p937_p13)  }
 0x921   :  { %763 = vsyncmov [#allocation4 + $0x1] }
 0x924   :  { %s764_s23 = vpop.sfrf %763 }
 0x925   :  { %p938_p0 = scmp.ne.s32.totalorder %s764_s23, 0 }
 0x927   :  { %768 = shalt.err (%p938_p0)  }
 0x928   :  { %770 = vsyncmov [#allocation4 + $0x2] }
 0x92b   :  { %s771_s9 = vpop.sfrf %770 }
 0x92c   :  { %p939_p1 = scmp.ne.s32.totalorder %s771_s9, 0 }
 0x92e   :  { %775 = shalt.err (%p939_p1)  }
 0x92f   :  { %777 = vsyncmov [#allocation4 + $0x3] }
 0x932   :  { %s778_s13 = vpop.sfrf %777 }
 0x933   :  { %p940_p2 = scmp.ne.s32.totalorder %s778_s13, 0 }
 0x935   :  { %782 = shalt.err (%p940_p2)  }
 0x936   :  { %784 = vsyncmov [#allocation4 + $0x4] }
 0x939   :  { %s785_s14 = vpop.sfrf %784 }
 0x93a   :  { %p941_p3 = scmp.ne.s32.totalorder %s785_s14, 0 }
 0x93c   :  { %789 = shalt.err (%p941_p3)  }
 0x93d   :  { %791 = vsyncmov [#allocation4 + $0x5] }
 0x940   :  { %s792_s16 = vpop.sfrf %791 }
 0x941   :  { %p942_p4 = scmp.ne.s32.totalorder %s792_s16, 0 }
 0x943   :  { %796 = shalt.err (%p942_p4)  }
 0x944   :  { %798 = vsyncmov [#allocation4 + $0x6] }
 0x947   :  { %s799_s1 = vpop.sfrf %798 }
 0x948   :  { %p943_p5 = scmp.ne.s32.totalorder %s799_s1, 0 }
 0x94a   :  { %803 = shalt.err (%p943_p5)  }
 0x94b   :  { %805 = vsyncmov [#allocation4 + $0x7] }
 0x94e   :  { %s806_s11 = vpop.sfrf %805 }
 0x94f   :  { %p944_p6 = scmp.ne.s32.totalorder %s806_s11, 0 }
 0x951   :  { %810 = shalt.err (%p944_p6)  }
 0x952   :  { %812 = vsyncmov [#allocation4 + $0x8] }
 0x955   :  { %s813_s3 = vpop.sfrf %812 }
 0x956   :  { %p945_p7 = scmp.ne.s32.totalorder %s813_s3, 0 }
 0x958   :  { %817 = shalt.err (%p945_p7)  }
 0x959   :  { %819 = vsyncmov [#allocation4 + $0x9] }
 0x95c   :  { %s820_s17 = vpop.sfrf %819 }
 0x95d   :  { %p946_p8 = scmp.ne.s32.totalorder %s820_s17, 0 }
 0x95f   :  { %824 = shalt.err (%p946_p8)  }
 0x960   :  { %826 = vsyncmov [#allocation4 + $0xa] }
 0x963   :  { %s827_s7 = vpop.sfrf %826 }
 0x964   :  { %p947_p9 = scmp.ne.s32.totalorder %s827_s7, 0 }
 0x966   :  { %831 = shalt.err (%p947_p9)  }
 0x967   :  { %833 = vsyncmov [#allocation4 + $0xb] }
 0x96a   :  { %s834_s26 = vpop.sfrf %833 }
 0x96b   :  { %p948_p10 = scmp.ne.s32.totalorder %s834_s26, 0 }
 0x96d   :  { %838 = shalt.err (%p948_p10)  }
 0x96e   :  { %840 = vsyncmov [#allocation4 + $0xc] }
 0x971   :  { %s841_s4 = vpop.sfrf %840 }
 0x972   :  { %p949_p11 = scmp.ne.s32.totalorder %s841_s4, 0 }
 0x974   :  { %845 = shalt.err (%p949_p11)  }
 0x975   :  { %847 = vsyncmov [#allocation4 + $0xd] }
 0x978   :  { %s848_s18 = vpop.sfrf %847 }
 0x979   :  { %p950_p12 = scmp.ne.s32.totalorder %s848_s18, 0 }
 0x97b   :  { %852 = shalt.err (%p950_p12)  }
 0x97c   :  { %854 = vsyncmov [#allocation4 + $0xe] }
 0x97f   :  { %s855_s2 = vpop.sfrf %854 }
 0x980   :  { %p951_p13 = scmp.ne.s32.totalorder %s855_s2, 0 }
 0x982   :  { %859 = shalt.err (%p951_p13)  }
 0x983   :  { %861 = vsyncmov [#allocation4 + $0xf] }
 0x986   :  { %s862_s19 = vpop.sfrf %861 }
 0x987   :  { %p952_p0 = scmp.ne.s32.totalorder %s862_s19, 0 }
 0x989   :  { %866 = shalt.err (%p952_p0)  }

</bundles_post_ra>
